<compile_context>
chip_gen: v7x
topology: tpu7x:2x2x1
jax: 0.10.0
libtpu: 0.0.40
codegen_flags: <defaults>
</compile_context>

<pallas_src>
import math

import jax
import jax.numpy as jnp
from jax.experimental import pallas as pl
from jax.experimental.pallas import tpu as pltpu


def _fget_kernel(
    elmo_ref,        # (TB, S, D)
    men_mask_ref,    # (TB, S)
    ctx_mask_ref,    # (TB, S)
    dist_ref,        # (TB, S)
    w_ec_ref,        # (D, 2D)   [men_attn_linear_m.W.T | ctx_attn_linear_c.W.T]
    wo_row_ref,      # (1, D)    men_attn_linear_o.weight
    wcm_t_ref,       # (D, D)    ctx_attn_linear_m.weight.T
    wd_row_ref,      # (1, D)    ctx_attn_linear_d.weight.T  (Linear(1, D))
    wco_row_ref,     # (1, D)    ctx_attn_linear_o.weight
    w_heads_ref,     # (2D, L+R) [output_linear.W.T | feat_to_latent.W.T]
    wll_t_ref,       # (R, L)    latent_to_label.weight.T
    scalar_ref,      # (1,)      latent_scalar  (SMEM)
    out_ref,         # (TB, L)
    out_latent_ref,  # (TB, L)
):
    e = elmo_ref[...]          # (TB, S, D)
    mm = men_mask_ref[...]     # (TB, S)
    cm = ctx_mask_ref[...]     # (TB, S)
    dd = dist_ref[...]         # (TB, S)

    TB, S, D = e.shape
    L = out_ref.shape[1]

    # ---- fused attention projections:  e @ [Wm | Wc]  ->  (TB*S, 2D) ----
    e2 = e.reshape(TB * S, D)
    h_all = jnp.dot(e2, w_ec_ref[...], preferred_element_type=jnp.float32)
    h_men = jnp.tanh(h_all[:, :D]).reshape(TB, S, D)
    h_ctx_base = h_all[:, D:].reshape(TB, S, D)

    # ---- mention attention (lane-dense scores, softmax over S) ----
    s_men = jnp.sum(h_men * wo_row_ref[...], axis=-1)                    # (TB, S)
    s_men = s_men + (1.0 - mm) * -10000.0
    s_men = s_men - jnp.max(s_men, axis=-1, keepdims=True)
    p_men = jnp.exp(s_men)
    p_men = p_men * pl.reciprocal(jnp.sum(p_men, axis=-1, keepdims=True))
    men_repr = jnp.einsum('bqs,bsd->bqd', p_men[:, None, :], e,
                          preferred_element_type=jnp.float32)[:, 0, :]   # (TB, D)

    # ---- context attention ----
    m_proj = jnp.dot(men_repr, wcm_t_ref[...],
                     preferred_element_type=jnp.float32)                 # (TB, D)
    h_ctx = jnp.tanh(h_ctx_base
                     + m_proj[:, None, :]
                     + dd[:, :, None] * wd_row_ref[...])                 # (TB, S, D)
    s_ctx = jnp.sum(h_ctx * wco_row_ref[...], axis=-1)                   # (TB, S)
    s_ctx = s_ctx + (1.0 - cm) * -10000.0
    s_ctx = s_ctx - jnp.max(s_ctx, axis=-1, keepdims=True)
    p_ctx = jnp.exp(s_ctx)
    p_ctx = p_ctx * pl.reciprocal(jnp.sum(p_ctx, axis=-1, keepdims=True))
    ctx_repr = jnp.einsum('bqs,bsd->bqd', p_ctx[:, None, :], e,
                          preferred_element_type=jnp.float32)[:, 0, :]   # (TB, D)

    # ---- fused output heads ----
    final = jnp.concatenate([men_repr, ctx_repr], axis=-1)               # (TB, 2D)
    heads = jnp.dot(final, w_heads_ref[...],
                    preferred_element_type=jnp.float32)                  # (TB, L+R)
    outputs = heads[:, :L]
    latent = heads[:, L:]
    outputs_latent = jnp.dot(latent, wll_t_ref[...],
                             preferred_element_type=jnp.float32)         # (TB, L)

    out_ref[...] = outputs + scalar_ref[0] * outputs_latent
    out_latent_ref[...] = outputs_latent


def fget_forward_nn(params, elmo, men_mask, ctx_mask, dist, *, block_b=8):
    """Pallas-backed equivalent of fgET.forward_nn (dropout = identity)."""
    B, S, D = elmo.shape
    L = params["wout_t"].shape[1]
    R = params["wfl_t"].shape[1]

    elmo = elmo.astype(jnp.float32)
    men_mask = men_mask.reshape(B, S).astype(jnp.float32)
    ctx_mask = ctx_mask.reshape(B, S).astype(jnp.float32)
    dist = dist.reshape(B, S).astype(jnp.float32)

    # Fuse shared-LHS projection weights and output-head weights once here.
    w_ec = jnp.concatenate([params["wm_t"], params["wc_t"]], axis=1)        # (D, 2D)
    w_heads = jnp.concatenate([params["wout_t"], params["wfl_t"]], axis=1)  # (2D, L+R)

    # Batch tile: multiple of 8 sublanes unless the whole batch fits one block.
    if B <= block_b:
        TB, Bp = B, B
    else:
        TB = block_b
        Bp = ((B + TB - 1) // TB) * TB
    pad = Bp - B
    if pad:
        elmo = jnp.pad(elmo, ((0, pad), (0, 0), (0, 0)))
        men_mask = jnp.pad(men_mask, ((0, pad), (0, 0)))
        ctx_mask = jnp.pad(ctx_mask, ((0, pad), (0, 0)))
        dist = jnp.pad(dist, ((0, pad), (0, 0)))

    grid_spec = pltpu.PrefetchScalarGridSpec(
        num_scalar_prefetch=0,
        grid=(Bp // TB,),
        in_specs=[
            pl.BlockSpec((TB, S, D), lambda b: (b, 0, 0)),     # elmo
            pl.BlockSpec((TB, S), lambda b: (b, 0)),           # men_mask
            pl.BlockSpec((TB, S), lambda b: (b, 0)),           # ctx_mask
            pl.BlockSpec((TB, S), lambda b: (b, 0)),           # dist
            pl.BlockSpec((D, 2 * D), lambda b: (0, 0)),        # w_ec
            pl.BlockSpec((1, D), lambda b: (0, 0)),            # wo_row
            pl.BlockSpec((D, D), lambda b: (0, 0)),            # wcm_t
            pl.BlockSpec((1, D), lambda b: (0, 0)),            # wd_row
            pl.BlockSpec((1, D), lambda b: (0, 0)),            # wco_row
            pl.BlockSpec((2 * D, L + R), lambda b: (0, 0)),    # w_heads
            pl.BlockSpec((R, L), lambda b: (0, 0)),            # wll_t
            pl.BlockSpec(memory_space=pltpu.MemorySpace.SMEM),  # latent_scalar
        ],
        out_specs=[
            pl.BlockSpec((TB, L), lambda b: (b, 0)),
            pl.BlockSpec((TB, L), lambda b: (b, 0)),
        ],
    )

    outputs, outputs_latent = pl.pallas_call(
        _fget_kernel,
        out_shape=(
            jax.ShapeDtypeStruct((Bp, L), jnp.float32),
            jax.ShapeDtypeStruct((Bp, L), jnp.float32),
        ),
        grid_spec=grid_spec,
        compiler_params=pltpu.CompilerParams(
            dimension_semantics=("parallel",)),
    )(
        elmo, men_mask, ctx_mask, dist,
        w_ec, params["wo_row"], params["wcm_t"], params["wd_row"],
        params["wco_row"], w_heads, params["wll_t"], params["latent_scalar"],
    )
    if pad:
        outputs = outputs[:B]
        outputs_latent = outputs_latent[:B]
    return outputs, outputs_latent


def fget_forward(params, elmo, labels, men_mask, ctx_mask, dist):
    """fgET.forward: outputs -> MultiLabelSoftMarginLoss."""
    outputs, _ = fget_forward_nn(params, elmo, men_mask, ctx_mask, dist)
    y = labels.astype(jnp.float32)
    per_class = y * jax.nn.log_sigmoid(outputs) + (1.0 - y) * jax.nn.log_sigmoid(-outputs)
    loss = -jnp.mean(jnp.mean(per_class, axis=1))
    return loss, outputs


def _reference_forward_nn(params, elmo, men_mask, ctx_mask, dist):
    """Pure-JAX reference mirroring the PyTorch forward_nn (dropout identity)."""
    men_attn = jnp.tanh(elmo @ params["wm_t"])
    men_attn = jnp.sum(men_attn * params["wo_row"][0], axis=-1, keepdims=True)
    men_attn = men_attn + (1.0 - men_mask[..., None]) * -10000.0
    men_attn = jax.nn.softmax(men_attn, axis=1)
    men_repr = jnp.sum(elmo * men_attn, axis=1)

    ctx_attn = jnp.tanh(elmo @ params["wc_t"]
                        + (men_repr @ params["wcm_t"])[:, None, :]
                        + dist[..., None] * params["wd_row"][0])
    ctx_attn = jnp.sum(ctx_attn * params["wco_row"][0], axis=-1, keepdims=True)
    ctx_attn = ctx_attn + (1.0 - ctx_mask[..., None]) * -10000.0
    ctx_attn = jax.nn.softmax(ctx_attn, axis=1)
    ctx_repr = jnp.sum(elmo * ctx_attn, axis=1)

    final = jnp.concatenate([men_repr, ctx_repr], axis=1)
    outputs = final @ params["wout_t"]
    latent = final @ params["wfl_t"]
    outputs_latent = latent @ params["wll_t"]
    outputs = outputs + params["latent_scalar"][0] * outputs_latent
    return outputs, outputs_latent


def init_params(key, label_size, elmo_dim):
    latent_size = int(math.sqrt(label_size))
    ks = jax.random.split(key, 9)

    def lin(k, fan_in, fan_out):
        # PyTorch nn.Linear default: U(-1/sqrt(fan_in), 1/sqrt(fan_in)); weight is (out, in).
        bound = 1.0 / math.sqrt(fan_in)
        w = jax.random.uniform(k, (fan_out, fan_in), jnp.float32, -bound, bound)
        return w.T  # pass transposed (in, out)

    D = elmo_dim
    params = {
        "wm_t": lin(ks[0], D, D),                       # (D, D)
        "wo_row": lin(ks[1], D, 1).T,                   # (1, D)
        "wc_t": lin(ks[2], D, D),                       # (D, D)
        "wcm_t": lin(ks[3], D, D),                      # (D, D)
        "wd_row": lin(ks[4], 1, D),                     # (1, D)  (Linear(1, D).weight.T)
        "wco_row": lin(ks[5], D, 1).T,                  # (1, D)
        "wout_t": lin(ks[6], 2 * D, label_size),        # (2D, L)
        "wfl_t": lin(ks[7], 2 * D, latent_size),        # (2D, R)
        "wll_t": lin(ks[8], latent_size, label_size),   # (R, L)
        "latent_scalar": jnp.array([0.1], jnp.float32),
    }
    return params


if __name__ == "__main__":
    B, S, D, L = 16, 8, 32, 16   # batch, seq, elmo_dim, label_size  (grid = 2 batch tiles)

    key = jax.random.PRNGKey(0)
    k_p, k_e, k_m, k_c, k_d, k_l = jax.random.split(key, 6)

    params = init_params(k_p, L, D)

    elmo = jax.random.normal(k_e, (B, S, D), jnp.float32)
    men_mask = (jax.random.uniform(k_m, (B, S)) > 0.5).astype(jnp.float32)
    men_mask = men_mask.at[:, 0].set(1.0)  # ensure at least one mention token
    ctx_mask = (jax.random.uniform(k_c, (B, S)) > 0.3).astype(jnp.float32)
    ctx_mask = ctx_mask.at[:, 1].set(1.0)
    dist = jax.random.uniform(k_d, (B, S), jnp.float32)
    labels = (jax.random.uniform(k_l, (B, L)) > 0.8).astype(jnp.float32)

    outputs, outputs_latent = fget_forward_nn(params, elmo, men_mask, ctx_mask, dist)
    loss, _ = fget_forward(params, elmo, labels, men_mask, ctx_mask, dist)
    jax.block_until_ready((outputs, outputs_latent, loss))

    ref_out, ref_lat = _reference_forward_nn(params, elmo, men_mask, ctx_mask, dist)
    assert jnp.allclose(outputs, ref_out, atol=1e-4, rtol=1e-4), "outputs mismatch"
    assert jnp.allclose(outputs_latent, ref_lat, atol=1e-4, rtol=1e-4), "latent mismatch"
    assert jnp.isfinite(loss)

    print("KERNEL_OK")
</pallas_src>

<mosaic_0001>
module attributes {stable_mosaic.version = 11 : i64} {
  func.func @_fget_kernel(%arg0: i32, %arg1: memref<8x8x32xf32, #tpu.memory_space<vmem>>, %arg2: memref<8x8xf32, #tpu.memory_space<vmem>>, %arg3: memref<8x8xf32, #tpu.memory_space<vmem>>, %arg4: memref<8x8xf32, #tpu.memory_space<vmem>>, %arg5: memref<32x64xf32, #tpu.memory_space<vmem>>, %arg6: memref<1x32xf32, #tpu.memory_space<vmem>>, %arg7: memref<32x32xf32, #tpu.memory_space<vmem>>, %arg8: memref<1x32xf32, #tpu.memory_space<vmem>>, %arg9: memref<1x32xf32, #tpu.memory_space<vmem>>, %arg10: memref<64x20xf32, #tpu.memory_space<vmem>>, %arg11: memref<4x16xf32, #tpu.memory_space<vmem>>, %arg12: memref<1xf32, #tpu.memory_space<smem>>, %arg13: memref<8x16xf32, #tpu.memory_space<vmem>>, %arg14: memref<8x16xf32, #tpu.memory_space<vmem>>) attributes {dimension_semantics = [#tpu.dimension_semantics<parallel>], iteration_bounds = array<i64: 2>, scalar_prefetch = 0 : i64, scratch_operands = 0 : i64, tpu.core_type = #tpu.core_type<tc>, window_params = [{transform_indices = @transform_0, window_bounds = array<i64: 8, 8, 32>}, {transform_indices = @transform_1, window_bounds = array<i64: 8, 8>}, {transform_indices = @transform_2, window_bounds = array<i64: 8, 8>}, {transform_indices = @transform_3, window_bounds = array<i64: 8, 8>}, {pipeline_mode = #tpu.pipeline_mode<synchronous>, transform_indices = @transform_4, window_bounds = array<i64: 32, 64>}, {pipeline_mode = #tpu.pipeline_mode<synchronous>, transform_indices = @transform_5, window_bounds = array<i64: 1, 32>}, {pipeline_mode = #tpu.pipeline_mode<synchronous>, transform_indices = @transform_6, window_bounds = array<i64: 32, 32>}, {pipeline_mode = #tpu.pipeline_mode<synchronous>, transform_indices = @transform_7, window_bounds = array<i64: 1, 32>}, {pipeline_mode = #tpu.pipeline_mode<synchronous>, transform_indices = @transform_8, window_bounds = array<i64: 1, 32>}, {pipeline_mode = #tpu.pipeline_mode<synchronous>, transform_indices = @transform_9, window_bounds = array<i64: 64, 20>}, {pipeline_mode = #tpu.pipeline_mode<synchronous>, transform_indices = @transform_10, window_bounds = array<i64: 4, 16>}, {transform_indices = @transform_11, window_bounds = array<i64: 1>}, {transform_indices = @transform_12, window_bounds = array<i64: 8, 16>}, {transform_indices = @transform_13, window_bounds = array<i64: 8, 16>}]} {
    %c0 = arith.constant 0 : index
    %c0_0 = arith.constant 0 : index
    %c0_1 = arith.constant 0 : index
    %0 = vector.load %arg1[%c0, %c0_0, %c0_1] : memref<8x8x32xf32, #tpu.memory_space<vmem>>, vector<8x8x32xf32>
    %c0_2 = arith.constant 0 : index
    %c0_3 = arith.constant 0 : index
    %1 = vector.load %arg2[%c0_2, %c0_3] : memref<8x8xf32, #tpu.memory_space<vmem>>, vector<8x8xf32>
    %c0_4 = arith.constant 0 : index
    %c0_5 = arith.constant 0 : index
    %2 = vector.load %arg3[%c0_4, %c0_5] : memref<8x8xf32, #tpu.memory_space<vmem>>, vector<8x8xf32>
    %c0_6 = arith.constant 0 : index
    %c0_7 = arith.constant 0 : index
    %3 = vector.load %arg4[%c0_6, %c0_7] : memref<8x8xf32, #tpu.memory_space<vmem>>, vector<8x8xf32>
    %4 = vector.shape_cast %0 : vector<8x8x32xf32> to vector<64x32xf32>
    %c0_8 = arith.constant 0 : index
    %c0_9 = arith.constant 0 : index
    %5 = vector.load %arg5[%c0_8, %c0_9] : memref<32x64xf32, #tpu.memory_space<vmem>>, vector<32x64xf32>
    %cst = arith.constant dense<0.000000e+00> : vector<64x64xf32>
    %6 = tpu.matmul %4, %5, %cst {dimension_numbers = #tpu.dot_dimension_numbers<[1], [0], [0], [1], [0, 0, 1, 1], [], []>} : vector<64x32xf32>, vector<32x64xf32>, vector<64x64xf32> -> vector<64x64xf32>
    %7 = vector.extract_strided_slice %6 {offsets = [0, 0], sizes = [64, 32], strides = [1, 1]} : vector<64x64xf32> to vector<64x32xf32>
    %8 = math.tanh %7 : vector<64x32xf32>
    %9 = vector.shape_cast %8 : vector<64x32xf32> to vector<8x8x32xf32>
    %10 = vector.extract_strided_slice %6 {offsets = [0, 32], sizes = [64, 32], strides = [1, 1]} : vector<64x64xf32> to vector<64x32xf32>
    %11 = vector.shape_cast %10 : vector<64x32xf32> to vector<8x8x32xf32>
    %c0_10 = arith.constant 0 : index
    %c0_11 = arith.constant 0 : index
    %12 = vector.load %arg6[%c0_10, %c0_11] : memref<1x32xf32, #tpu.memory_space<vmem>>, vector<1x32xf32>
    %13 = vector.shape_cast %12 : vector<1x32xf32> to vector<1x1x32xf32>
    %14 = vector.broadcast %13 : vector<1x1x32xf32> to vector<8x8x32xf32>
    %15 = arith.mulf %9, %14 : vector<8x8x32xf32>
    %cst_12 = arith.constant dense<0.000000e+00> : vector<8x8xf32>
    %16 = vector.multi_reduction <add>, %15, %cst_12 [2] : vector<8x8x32xf32> to vector<8x8xf32>
    %cst_13 = arith.constant 1.000000e+00 : f32
    %17 = vector.broadcast %cst_13 : f32 to vector<8x8xf32>
    %18 = arith.subf %17, %1 : vector<8x8xf32>
    %cst_14 = arith.constant -1.000000e+04 : f32
    %19 = vector.broadcast %cst_14 : f32 to vector<8x8xf32>
    %20 = arith.mulf %18, %19 : vector<8x8xf32>
    %21 = arith.addf %16, %20 : vector<8x8xf32>
    %cst_15 = arith.constant dense<0xFF800000> : vector<8xf32>
    %22 = vector.multi_reduction <maximumf>, %21, %cst_15 [1] : vector<8x8xf32> to vector<8xf32>
    %23 = vector.shape_cast %22 : vector<8xf32> to vector<8x1xf32>
    %24 = vector.broadcast %23 : vector<8x1xf32> to vector<8x8xf32>
    %25 = arith.subf %21, %24 : vector<8x8xf32>
    %26 = math.exp %25 : vector<8x8xf32>
    %cst_16 = arith.constant dense<0.000000e+00> : vector<8xf32>
    %27 = vector.multi_reduction <add>, %26, %cst_16 [1] : vector<8x8xf32> to vector<8xf32>
    %28 = vector.shape_cast %27 : vector<8xf32> to vector<8x1xf32>
    %29 = tpu.reciprocal %28 : vector<8x1xf32> -> vector<8x1xf32>
    %30 = vector.broadcast %29 : vector<8x1xf32> to vector<8x8xf32>
    %31 = arith.mulf %26, %30 : vector<8x8xf32>
    %32 = vector.shape_cast %31 : vector<8x8xf32> to vector<8x1x8xf32>
    "tpu.trace_start"() <{level = 10 : i32, message = "bqs,bsd->bqd"}> : () -> ()
    %cst_17 = arith.constant dense<0.000000e+00> : vector<8x1x32xf32>
    %33 = tpu.matmul %32, %0, %cst_17 {dimension_numbers = #tpu.dot_dimension_numbers<[2], [1], [1], [2], [0, 0, 0, 1, 1, 2], [0], [0]>} : vector<8x1x8xf32>, vector<8x8x32xf32>, vector<8x1x32xf32> -> vector<8x1x32xf32>
    "tpu.trace_stop"() : () -> ()
    %34 = vector.shape_cast %33 : vector<8x1x32xf32> to vector<8x32xf32>
    %c0_18 = arith.constant 0 : index
    %c0_19 = arith.constant 0 : index
    %35 = vector.load %arg7[%c0_18, %c0_19] : memref<32x32xf32, #tpu.memory_space<vmem>>, vector<32x32xf32>
    %cst_20 = arith.constant dense<0.000000e+00> : vector<8x32xf32>
    %36 = tpu.matmul %34, %35, %cst_20 {dimension_numbers = #tpu.dot_dimension_numbers<[1], [0], [0], [1], [0, 0, 1, 1], [], []>} : vector<8x32xf32>, vector<32x32xf32>, vector<8x32xf32> -> vector<8x32xf32>
    %37 = vector.shape_cast %36 : vector<8x32xf32> to vector<8x1x32xf32>
    %38 = vector.broadcast %37 : vector<8x1x32xf32> to vector<8x8x32xf32>
    %39 = arith.addf %11, %38 : vector<8x8x32xf32>
    %40 = vector.shape_cast %3 : vector<8x8xf32> to vector<8x8x1xf32>
    %c0_21 = arith.constant 0 : index
    %c0_22 = arith.constant 0 : index
    %41 = vector.load %arg8[%c0_21, %c0_22] : memref<1x32xf32, #tpu.memory_space<vmem>>, vector<1x32xf32>
    %42 = vector.shape_cast %41 : vector<1x32xf32> to vector<1x1x32xf32>
    %43 = vector.broadcast %40 : vector<8x8x1xf32> to vector<8x8x32xf32>
    %44 = vector.broadcast %42 : vector<1x1x32xf32> to vector<8x8x32xf32>
    %45 = arith.mulf %43, %44 : vector<8x8x32xf32>
    %46 = arith.addf %39, %45 : vector<8x8x32xf32>
    %47 = math.tanh %46 : vector<8x8x32xf32>
    %c0_23 = arith.constant 0 : index
    %c0_24 = arith.constant 0 : index
    %48 = vector.load %arg9[%c0_23, %c0_24] : memref<1x32xf32, #tpu.memory_space<vmem>>, vector<1x32xf32>
    %49 = vector.shape_cast %48 : vector<1x32xf32> to vector<1x1x32xf32>
    %50 = vector.broadcast %49 : vector<1x1x32xf32> to vector<8x8x32xf32>
    %51 = arith.mulf %47, %50 : vector<8x8x32xf32>
    %cst_25 = arith.constant dense<0.000000e+00> : vector<8x8xf32>
    %52 = vector.multi_reduction <add>, %51, %cst_25 [2] : vector<8x8x32xf32> to vector<8x8xf32>
    %cst_26 = arith.constant 1.000000e+00 : f32
    %53 = vector.broadcast %cst_26 : f32 to vector<8x8xf32>
    %54 = arith.subf %53, %2 : vector<8x8xf32>
    %cst_27 = arith.constant -1.000000e+04 : f32
    %55 = vector.broadcast %cst_27 : f32 to vector<8x8xf32>
    %56 = arith.mulf %54, %55 : vector<8x8xf32>
    %57 = arith.addf %52, %56 : vector<8x8xf32>
    %cst_28 = arith.constant dense<0xFF800000> : vector<8xf32>
    %58 = vector.multi_reduction <maximumf>, %57, %cst_28 [1] : vector<8x8xf32> to vector<8xf32>
    %59 = vector.shape_cast %58 : vector<8xf32> to vector<8x1xf32>
    %60 = vector.broadcast %59 : vector<8x1xf32> to vector<8x8xf32>
    %61 = arith.subf %57, %60 : vector<8x8xf32>
    %62 = math.exp %61 : vector<8x8xf32>
    %cst_29 = arith.constant dense<0.000000e+00> : vector<8xf32>
    %63 = vector.multi_reduction <add>, %62, %cst_29 [1] : vector<8x8xf32> to vector<8xf32>
    %64 = vector.shape_cast %63 : vector<8xf32> to vector<8x1xf32>
    %65 = tpu.reciprocal %64 : vector<8x1xf32> -> vector<8x1xf32>
    %66 = vector.broadcast %65 : vector<8x1xf32> to vector<8x8xf32>
    %67 = arith.mulf %62, %66 : vector<8x8xf32>
    %68 = vector.shape_cast %67 : vector<8x8xf32> to vector<8x1x8xf32>
    "tpu.trace_start"() <{level = 10 : i32, message = "bqs,bsd->bqd"}> : () -> ()
    %cst_30 = arith.constant dense<0.000000e+00> : vector<8x1x32xf32>
    %69 = tpu.matmul %68, %0, %cst_30 {dimension_numbers = #tpu.dot_dimension_numbers<[2], [1], [1], [2], [0, 0, 0, 1, 1, 2], [0], [0]>} : vector<8x1x8xf32>, vector<8x8x32xf32>, vector<8x1x32xf32> -> vector<8x1x32xf32>
    "tpu.trace_stop"() : () -> ()
    %70 = vector.shape_cast %69 : vector<8x1x32xf32> to vector<8x32xf32>
    %71 = tpu.concatenate %34, %70 in 1 : vector<8x32xf32>, vector<8x32xf32> -> vector<8x64xf32>
    %c0_31 = arith.constant 0 : index
    %c0_32 = arith.constant 0 : index
    %72 = vector.load %arg10[%c0_31, %c0_32] : memref<64x20xf32, #tpu.memory_space<vmem>>, vector<64x20xf32>
    %cst_33 = arith.constant dense<0.000000e+00> : vector<8x20xf32>
    %73 = tpu.matmul %71, %72, %cst_33 {dimension_numbers = #tpu.dot_dimension_numbers<[1], [0], [0], [1], [0, 0, 1, 1], [], []>} : vector<8x64xf32>, vector<64x20xf32>, vector<8x20xf32> -> vector<8x20xf32>
    %74 = vector.extract_strided_slice %73 {offsets = [0, 0], sizes = [8, 16], strides = [1, 1]} : vector<8x20xf32> to vector<8x16xf32>
    %75 = vector.extract_strided_slice %73 {offsets = [0, 16], sizes = [8, 4], strides = [1, 1]} : vector<8x20xf32> to vector<8x4xf32>
    %c0_34 = arith.constant 0 : index
    %c0_35 = arith.constant 0 : index
    %76 = vector.load %arg11[%c0_34, %c0_35] : memref<4x16xf32, #tpu.memory_space<vmem>>, vector<4x16xf32>
    %cst_36 = arith.constant dense<0.000000e+00> : vector<8x16xf32>
    %77 = tpu.matmul %75, %76, %cst_36 {dimension_numbers = #tpu.dot_dimension_numbers<[1], [0], [0], [1], [0, 0, 1, 1], [], []>} : vector<8x4xf32>, vector<4x16xf32>, vector<8x16xf32> -> vector<8x16xf32>
    %c0_37 = arith.constant 0 : index
    %78 = memref.load %arg12[%c0_37] : memref<1xf32, #tpu.memory_space<smem>>
    %79 = vector.broadcast %78 : f32 to vector<8x16xf32>
    %80 = arith.mulf %79, %77 : vector<8x16xf32>
    %81 = arith.addf %74, %80 : vector<8x16xf32>
    %c0_38 = arith.constant 0 : index
    %c0_39 = arith.constant 0 : index
    %82 = vector.load %arg13[%c0_38, %c0_39] : memref<8x16xf32, #tpu.memory_space<vmem>>, vector<8x16xf32>
    tpu.vector_store %arg13[%c0_38, %c0_39], %81 {strides = array<i32>} : memref<8x16xf32, #tpu.memory_space<vmem>>, vector<8x16xf32>,
    %c0_40 = arith.constant 0 : index
    %c0_41 = arith.constant 0 : index
    %83 = vector.load %arg14[%c0_40, %c0_41] : memref<8x16xf32, #tpu.memory_space<vmem>>, vector<8x16xf32>
    tpu.vector_store %arg14[%c0_40, %c0_41], %77 {strides = array<i32>} : memref<8x16xf32, #tpu.memory_space<vmem>>, vector<8x16xf32>,
    return
  }
  func.func @transform_0(%arg0: i32) -> (i32, i32, i32) {
    %c0_i32 = arith.constant 0 : i32
    %c0_i32_0 = arith.constant 0 : i32
    %c0_i32_1 = arith.constant 0 : i32
    return %arg0, %c0_i32, %c0_i32_0 : i32, i32, i32
  }
  func.func @transform_1(%arg0: i32) -> (i32, i32) {
    %c0_i32 = arith.constant 0 : i32
    %c0_i32_0 = arith.constant 0 : i32
    return %arg0, %c0_i32 : i32, i32
  }
  func.func @transform_2(%arg0: i32) -> (i32, i32) {
    %c0_i32 = arith.constant 0 : i32
    %c0_i32_0 = arith.constant 0 : i32
    return %arg0, %c0_i32 : i32, i32
  }
  func.func @transform_3(%arg0: i32) -> (i32, i32) {
    %c0_i32 = arith.constant 0 : i32
    %c0_i32_0 = arith.constant 0 : i32
    return %arg0, %c0_i32 : i32, i32
  }
  func.func @transform_4(%arg0: i32) -> (i32, i32) {
    %c0_i32 = arith.constant 0 : i32
    %c0_i32_0 = arith.constant 0 : i32
    %c0_i32_1 = arith.constant 0 : i32
    return %c0_i32, %c0_i32_0 : i32, i32
  }
  func.func @transform_5(%arg0: i32) -> (i32, i32) {
    %c0_i32 = arith.constant 0 : i32
    %c0_i32_0 = arith.constant 0 : i32
    %c0_i32_1 = arith.constant 0 : i32
    return %c0_i32, %c0_i32_0 : i32, i32
  }
  func.func @transform_6(%arg0: i32) -> (i32, i32) {
    %c0_i32 = arith.constant 0 : i32
    %c0_i32_0 = arith.constant 0 : i32
    %c0_i32_1 = arith.constant 0 : i32
    return %c0_i32, %c0_i32_0 : i32, i32
  }
  func.func @transform_7(%arg0: i32) -> (i32, i32) {
    %c0_i32 = arith.constant 0 : i32
    %c0_i32_0 = arith.constant 0 : i32
    %c0_i32_1 = arith.constant 0 : i32
    return %c0_i32, %c0_i32_0 : i32, i32
  }
  func.func @transform_8(%arg0: i32) -> (i32, i32) {
    %c0_i32 = arith.constant 0 : i32
    %c0_i32_0 = arith.constant 0 : i32
    %c0_i32_1 = arith.constant 0 : i32
    return %c0_i32, %c0_i32_0 : i32, i32
  }
  func.func @transform_9(%arg0: i32) -> (i32, i32) {
    %c0_i32 = arith.constant 0 : i32
    %c0_i32_0 = arith.constant 0 : i32
    %c0_i32_1 = arith.constant 0 : i32
    return %c0_i32, %c0_i32_0 : i32, i32
  }
  func.func @transform_10(%arg0: i32) -> (i32, i32) {
    %c0_i32 = arith.constant 0 : i32
    %c0_i32_0 = arith.constant 0 : i32
    %c0_i32_1 = arith.constant 0 : i32
    return %c0_i32, %c0_i32_0 : i32, i32
  }
  func.func @transform_11(%arg0: i32) -> i32 {
    %c0_i32 = arith.constant 0 : i32
    %c0_i32_0 = arith.constant 0 : i32
    return %c0_i32 : i32
  }
  func.func @transform_12(%arg0: i32) -> (i32, i32) {
    %c0_i32 = arith.constant 0 : i32
    %c0_i32_0 = arith.constant 0 : i32
    return %arg0, %c0_i32 : i32, i32
  }
  func.func @transform_13(%arg0: i32) -> (i32, i32) {
    %c0_i32 = arith.constant 0 : i32
    %c0_i32_0 = arith.constant 0 : i32
    return %arg0, %c0_i32 : i32, i32
  }
}

</mosaic_0001>

<bundles_post_ra>
// kernel: tpu_custom_call.1
= control target key start
LH: loop header
LB: loop body
LE: loop exit
PB: predicated region body
PF: predicated region fallthrough
CT: control target
= control target key end

     0   :  { %s4789_s0 = inlined_call_operand.vmem [shape: f32[16,8,32], index: 0, kind: input, shape index: {}]   ;;  %s4790_s1 = inlined_call_operand.vmem [shape: f32[16,8], index: 1, kind: input, shape index: {}]   ;;  %s4791_s2 = inlined_call_operand.vmem [shape: f32[16,8], index: 2, kind: input, shape index: {}]   ;;  %s4792_s3 = inlined_call_operand.vmem [shape: f32[16,8], index: 3, kind: input, shape index: {}]   ;;  %s4793_s4 = inlined_call_operand.vmem [shape: f32[32,64], index: 4, kind: input, shape index: {}]   ;;  %s4794_s5 = inlined_call_operand.vmem [shape: f32[1,32], index: 5, kind: input, shape index: {}]   ;;  %s4795_s6 = inlined_call_operand.hbm [shape: f32[32,32], index: 6, kind: input, shape index: {}]   ;;  %s4796_s7 = inlined_call_operand.vmem [shape: f32[1,32], index: 7, kind: input, shape index: {}]   ;;  %s4797_s8 = inlined_call_operand.vmem [shape: f32[1,32], index: 8, kind: input, shape index: {}]   ;;  %s4798_s9 = inlined_call_operand.vmem [shape: f32[64,20], index: 9, kind: input, shape index: {}]   ;;  %s4799_s10 = inlined_call_operand.vmem [shape: f32[4,16], index: 10, kind: input, shape index: {}]   ;;  %s4800_s11 = inlined_call_operand.<no memory space> [shape: f32[1], index: 11, kind: input, shape index: {}]   ;;  %s4801_s12 = inlined_call_operand.hbm [shape: f32[16,16], index: 12, kind: output, shape index: {0}]   ;;  %s4802_s13 = inlined_call_operand.hbm [shape: f32[16,16], index: 13, kind: output, shape index: {1}]  }
   0x1   :  { %4808 = sst [smem:[#allocation14_spill]] %s4789_s0 }
   0x2   :  { %4809 = sst [smem:[#allocation15_spill]] %s4795_s6 }
   0x3   :  { %19 = sst [smem:[#allocation2]] %s4800_s11 }
   0x4   :  { %20 = vsyncpa [#allocation4], 0 }
   0x5   :  { %21 = vsyncpa [#allocation5], 0 }
   0x6   :  { %23 = vsyncpa [#allocation5 + $0x1], 0 }
   0x7   :  { %24 = vsyncpa [#allocation8], 0 }
   0x8   :  { %26 = vsyncpa [#allocation8 + $0x1], 0  ;;  %s4079_s27 = smov 0   ;;  %s4081_s28 = smov 0  }
   0x9   :  { %s4083_s29 = smov 0   ;;  %s4085_s30 = smov 0  }
   0xa LB: > { %4810 = sst [smem:[#allocation12_spill]] %s3987_s29  ;;  %s4100_s11 = sadd.s32 4294967295, %s3991_s30   ;;  %s3991_s30 = sphi %s4085_s30, %s4829_s30   ;;  %s3987_s29 = sphi %s4083_s29, %s4826_s29   ;;  %s3983_s28 = sphi %s4081_s28, %s4828_s28   ;;  %s3979_s27 = sphi %s4079_s27, %s4827_s27  }
   0xb   : > { %s3453_s14 = sadd.s32 4294967294, %s3991_s30   ;;  %s4104_s15 = sadd.s32 1, %s3991_s30  }
   0xc   : > { %s311_s16 = sadd.s32 1, %s3987_s29  ;;  %s308_s17 = ssub.s32 %s3991_s30, %s4104_s15 }
   0xd   : > { %p321_p0 = scmp.ne.s32.totalorder %s3987_s29, %s3983_s28  ;;  %p309_p1 = scmp.eq.s32.totalorder %s308_s17, 0 }
   0xe   : > { %p322_p2 = scmp.eq.s32.totalorder %s4100_s11, 1  ;;  %p327_p3 = scmp.ne.s32.totalorder %s3983_s28, %s3979_s27 }
   0xf   : > { %p328_p4 = scmp.eq.s32.totalorder %s3453_s14, 1  ;;  %p3454_p7 = scmp.ge.s32.totalorder %s3991_s30, 1 }
  0x10   : > { %s4115_s18 = scalar_select %p309_p1, %s3987_s29, %s311_s16  }
  0x11   : > { %p4117_p5 = por %p322_p2, %p321_p0  ;;  %p4121_p6 = por %p328_p4, %p327_p3 }
  0x12   : > { %4811 = sst [smem:[#allocation13_spill]] %s4115_s18  ;;  %p361_p8 = scmp.lt.s32.totalorder %s3991_s30, 3 }
  0x13   : > { %s4812_s19 = scalar_select %p4117_p5, 1, 0 }
  0x14   : > { %s4813_s20 = scalar_select %p4121_p6, 1, 0 }
  0x15   : > { %p4804_p9 = scmp.eq.s32.totalorder %s4100_s11, 0  ;;  %p4128_p10 = pnand %p3454_p7, %p361_p8 }
  0x16   : > { %s3993_s22 = smov [#allocation3]   ;;  %s4816_s6 = sld [smem:[#allocation15_spill]] }
  0x17   : > { %s4814_s21 = scalar_select %p4128_p10, 1, 0 }
  0x18   : > { %s379_s23 = sshll.u32 %s3993_s22, 4  ;;  %p3732_p11 = pneg %p4128_p10  ;;  %s380_s23 = int_to_ptr.vmem [resolvable:$true] %s379_s23 }
  0x1a   : > { %p4136_p12 = pnand %p4804_p9, %p3732_p11 }
  0x1c   : > { %s3865_s14 = scalar_lea.hbm %s4816_s6, 512  ;;  %p3867_p0 = pneg %p4136_p12 }
  0x1d   : > { %p3866_p13 = scmp.ne.s32.totalorder %s4816_s6, %s3865_s14  ;;  %p3872_p3 = scmp.lt.u32.totalorder %s3865_s14, %s4816_s6 }
  0x1f   : > { %p3868_p1 = pnand %p3867_p0, %p3866_p13 }
  0x21   : > { %p3869_p2 = pneg %p3868_p1 }
  0x23   : > { %p3874_p4 = pnand %p3872_p3, %p3869_p2 }
  0x25   : > { %3877 = shalt.err (!%p3874_p4)
}
  0x26   : > { %s3878_s29 = scalar_lea.vmem %s380_s23, 512  ;;  %p3886_p9 = scmp.lt.s32.totalorder %s380_s23, %s380_s23 }
  0x27   : > { %p3879_p7 = scmp.ne.s32.totalorder %s380_s23, %s3878_s29  ;;  %p3887_p6 = scmp.lt.s32.totalorder %s3878_s29, %s3878_s29 }
  0x29   : > { %p3881_p8 = pnand %p3879_p7, %p3867_p0  ;;  %p3888_p5 = por %p3887_p6, %p3886_p9 }
  0x2b   : > { %p3882_p11 = pneg %p3881_p8 }
  0x2d   : > { %p3889_p10 = pnand %p3888_p5, %p3882_p11 }
  0x2f   : > { %3892 = shalt.err (!%p3889_p10)
}
  0x30   : > { %s3994_s25 = smov 128   ;;  %s3995_s26 = smov 8  }
  0x31   : > { %3735 = dma.hbm_to_vmem [thread:$0]  (!%p4136_p12), %s4816_s6, 512, %s380_s23, [#allocation4], %s3994_s25, %s3994_s25, %s3995_s26  }
  0x32   : > { %p4817_p13 = scmp.ne.s32.totalorder %s4814_s21, 0 }
  0x33   : > { %p4818_p1 = scmp.eq.s32.totalorder (!%p4817_p13), %s4100_s11, 0 }
  0x34   : > { %440 = sbr.rel (%p4817_p13) target bundleno = 3753 (0xea9), region = 68 }
  0x3b   : > { %3966 = dma.done.wait (%p4818_p1), [#allocation4], 512   ;;  %p4819_p0 = pmov %p4818_p1 }
  0x3c   : > { %s3461_s29 = sshll.u32 %s4100_s11, 3  ;;  %p507_p5 = scmp.lt.s32.totalorder %s4100_s11, 1  ;;  %v714_v0 = vlaneseq  ;;  %vm534_vm0 = vcmask 261120   ;;  %v530_v1 = vld [vmem:[%s4793_s4] sm:$0xff]  ;;  %v531_v2 = vld [vmem:[%s4793_s4 + $0x8] sm:$0xff]  ;;  %v532_v3 = vld [vmem:[%s4793_s4 + $0x10] sm:$0xff] }
  0x3d   : > { %3968 = vsyncadd (%p4819_p0), [#allocation4], 4294966784  ;;  %p502_p6 = scmp.lt.s32.totalorder %s3461_s29, 15  ;;  %s4820_s0 = sld [smem:[#allocation14_spill]]  ;;  %v3698_v4 = vpack.c.bf16 %v531_v2, %v530_v1  ;;  %v533_v5 = vld [vmem:[%s4793_s4 + $0x18] sm:$0xff]  ;;  %v3996_v1 = vmov 0  }
  0x3e   : > { %s508_s18 = scalar_select %p507_p5, %s4100_s11, 1  ;;  %v4192_v7 = vshrl.u32 %v714_v0, 7  ;;  %v3702_v8 = vpack.c.bf16 %v533_v5, %v532_v3  ;;  %v3474_v37 = vld [vmem:[%s4794_s5] ss:$0 sm:$0xff]  ;;  %3789 = vset.pattern.permute.xlu1 %v3996_v1  ;;  %3790 = vset.pattern.permute.xlu0 %v3996_v1  ;;  %vm852_vm1 = vcmask 1041409   ;;  %vm854_vm2 = vcmask 1042434  }
  0x3f   : > { %s4831_s29 = smov (!%p502_p6, %s3461_s29), 15  ;;  %3699 = vmatprep.subr.bf16.mxu0 %v3698_v4  ;;  %vm856_vm3 = vcmask 1043459   ;;  %vm858_vm4 = vcmask 1044484   ;;  %vm860_vm5 = vcmask 1045509   ;;  %vm862_vm6 = vcmask 1046534   ;;  %s4002_s16 = smov 96  }
  0x40   : > { %s3462_s24 = sshll.u32 %s4831_s29, 3  ;;  %s4165_s23 = sshll.u32 %s508_s18, 3  ;;  %3701 = vmatpush3.bf16.msra.mxu0 %v3698_v4  ;;  %v4197_v11 = vsub.s32 1, %v4192_v7  ;;  %v4200_v12 = vsub.s32 0, %v4192_v7  ;;  %v4205_v14 = vsub.s32 2, %v4192_v7  ;;  %v4211_v16 = vsub.s32 4, %v4192_v7 }
  0x41   : > { %s510_s25 = scalar_lea.vmem %s4790_s1, %s4165_s23  ;;  %3703 = vmatprep.subr.bf16.mxu0 %v3702_v8  ;;  %v4225_v21 = vsub.s32 3, %v4192_v7  ;;  %v4242_v26 = vsub.s32 5, %v4192_v7  ;;  %v4299_v2 = vsub.s32 7, %v4192_v7  ;;  %v4302_v3 = vsub.s32 6, %v4192_v7  ;;  %s518_s29 = scalar_lea.vmem %s4792_s3, %s4165_s23 }
  0x42   : > { %v527_v9 = vld [vmem:[%s510_s25] sm:$0xff]  ;;  %vm864_vm7 = vcmask 1047559   ;;  %vm867_vm8 = vcmask 64512   ;;  %vm3998_vm9 = vmmov 0   ;;  %s514_s6 = scalar_lea.vmem %s4791_s2, %s4165_s23  ;;  %vm3120_vm10 = vcmask 523264   ;;  %s3275_s23 = sld [smem:[#allocation2]] }
  0x43   : > { %s4170_s22 = scalar_lea.vmem %s4820_s0, %s3462_s24  ;;  %v711_v10 = vsub.f32 1.0, %v527_v9  ;;  %s4000_s24 = smov 32   ;;  %vm3201_vm11 = vcmask 1043456   ;;  %vm3198_vm12 = vcmask 31744   ;;  %vm3279_vm13 = vcmask 130048  }
  0x44   : > { %v4185_v6 = vld [vmem:[%s4170_s22] sm:$0xff]  ;;  %3705 = vmatpush3.bf16.msra.mxu0 %v3702_v8  ;;  %v4208_v15 = vld [vmem:[%s4170_s22 + $0x8] sm:$0xff]  ;;  %v4214_v17 = vld [vmem:[%s4170_s22 + $0x10] sm:$0xff]  ;;  %p4821_p10 = scmp.ne.s32.totalorder %s4812_s19, 0 }
  0x45   : > { %3571 = vmatprep.mubr.msk.f32.mxu0 %vm534_vm0, %v4185_v6  ;;  %v4202_v13 = vmul.f32 -10000.0, %v711_v10  ;;  %v4230_v22 = vld [vmem:[%s4170_s22 + $0x18] sm:$0xff]  ;;  %v4235_v24 = vld [vmem:[%s4170_s22 + $0x20] sm:$0xff]  ;;  %v4247_v27 = vld [vmem:[%s4170_s22 + $0x28] sm:$0xff] }
  0x46   : > { %v4250_v28 = vld [vmem:[%s4170_s22 + $0x30] sm:$0xff]  ;;  %v4259_v30 = vld [vmem:[%s4170_s22 + $0x38] sm:$0xff] }
  0x47   : > { %v724_v18 = vrot.slane %v4202_v13, %v4197_v11  ;;  %v717_v19 = vrot.slane %v4202_v13, %v4200_v12  ;;  %3572 = vmatmul.mubr.msk.f32.vlgmr.msra.gmra.mrb[0].mxu0 %vm534_vm0, %v4208_v15  ;;  %v731_v20 = vrot.slane %v4202_v13, %v4205_v14  ;;  %v745_v23 = vrot.slane %v4202_v13, %v4211_v16 }
  0x48   : > { %3574 = vmatprep.mubr.msk.f32.mxu0 %vm534_vm0, %v4214_v17  ;;  %v738_v25 = vrot.slane %v4202_v13, %v4225_v21  ;;  %v752_v29 = vrot.slane %v4202_v13, %v4242_v26  ;;  %v766_v4 = vrot.slane %v4202_v13, %v4299_v2  ;;  %v759_v5 = vrot.slane %v4202_v13, %v4302_v3 }
  0x49   : > { %726 = vbcast.lane.b32.xlu1 %v724_v18, 256  ;;  %719 = vbcast.lane.b32.xlu0 %v717_v19, 256 }
  0x4b   : > { %3575 = vmatmul.mubr.msk.f32.gmra.mrb[2].mxu0 %vm534_vm0, %v4230_v22 }
  0x4c   : > { %3577 = vmatprep.mubr.msk.f32.mxu0 %vm534_vm0, %v4235_v24 }
  0x4d   : > { %733 = vbcast.lane.b32.xlu1 %v731_v20, 256  ;;  %747 = vbcast.lane.b32.xlu0 %v745_v23, 256 }
  0x4f   : > { %3578 = vmatmul.mubr.msk.f32.gmra.mrb[4].mxu0 %vm534_vm0, %v4247_v27 }
  0x50   : > { %3580 = vmatprep.mubr.msk.f32.mxu0 %vm534_vm0, %v4250_v28 }
  0x51   : > { %740 = vbcast.lane.b32.xlu1 %v738_v25, 256 }
  0x53   : > { %3581 = vmatmul.mubr.msk.f32.gmra.mrb[6].mxu0 %vm534_vm0, %v4259_v30 }
  0x55   : > { %754 = vbcast.lane.b32.xlu1 %v752_v29, 256 }
  0xbb   : > { %v727_v8 = vpop.permute.xlu1 %726  ;;  %v720_v10 = vpop.permute.xlu0 %719 }
  0xbf   : > { %v734_v9 = vpop.permute.xlu1 %733  ;;  %v748_v19 = vpop.permute.xlu0 %747 }
  0xc3   : > { %v741_v18 = vpop.permute.xlu1 %740 }
  0xc7   : > { %v755_v20 = vpop.permute.xlu1 %754 }
 0x11a   : > { %v4263_v31 = vpop.f32.mrb[0].mxu0 }
 0x11b   : > { %3791 = vtanh.f32 %v4263_v31  ;;  %v4266_v32 = vpop.f32.mrb[1].mxu0 }
 0x11c   : > { %3793 = vtanh.f32 %v4266_v32 }
 0x11e   : > { %v4269_v33 = vpop.f32.mrb[2].mxu0 }
 0x11f   : > { %3795 = vtanh.f32 %v4269_v33  ;;  %v4272_v34 = vpop.f32.mrb[3].mxu0 }
 0x120   : > { %3797 = vtanh.f32 %v4272_v34 }
 0x122   : > { %v4275_v35 = vpop.f32.mrb[4].mxu0 }
 0x123   : > { %3799 = vtanh.f32 %v4275_v35  ;;  %v4278_v36 = vpop.f32.mrb[5].mxu0 }
 0x124   : > { %3801 = vtanh.f32 %v4278_v36 }
 0x125   : > { %v3792_v38 = vpop.eup %3791 }
 0x126   : > { %v3794_v39 = vpop.eup %3793  ;;  %v4284_v40 = vpop.f32.mrb[6].mxu0  ;;  %v680_v41 = vmul.f32 %v3792_v38, %v3474_v37 }
 0x127   : > { %3803 = vtanh.f32 %v4284_v40  ;;  %v4287_v42 = vpop.f32.mrb[7].mxu0  ;;  %v679_v44 = vmul.f32 %v3794_v39, %v3474_v37 }
 0x128   : > { %3805 = vtanh.f32 %v4287_v42  ;;  %v690_v43 = vsel %vm534_vm0, %v680_v41, 0.0 }
 0x129   : > { %v3796_v45 = vpop.eup %3795  ;;  %691 = vadd.xlane.f32.xlu0 %v690_v43  ;;  %v687_v48 = vsel %vm534_vm0, %v679_v44, 0.0 }
 0x12a   : > { %v3798_v46 = vpop.eup %3797  ;;  %v682_v47 = vmul.f32 %v3796_v45, %v3474_v37 }
 0x12b   : > { %v681_v50 = vmul.f32 %v3798_v46, %v3474_v37 }
 0x12c   : > { %v696_v49 = vsel %vm534_vm0, %v682_v47, 0.0 }
 0x12d   : > { %v3800_v51 = vpop.eup %3799  ;;  %688 = vadd.xlane.f32.xlu0 %v687_v48  ;;  %697 = vadd.xlane.f32.xlu1 %v696_v49  ;;  %v693_v54 = vsel %vm534_vm0, %v681_v50, 0.0 }
 0x12e   : > { %v3802_v52 = vpop.eup %3801  ;;  %v684_v55 = vmul.f32 %v3800_v51, %v3474_v37 }
 0x12f   : > { %v683_v53 = vmul.f32 %v3802_v52, %v3474_v37 }
 0x130   : > { %v702_v60 = vsel %vm534_vm0, %v684_v55, 0.0 }
 0x131   : > { %v3804_v56 = vpop.eup %3803  ;;  %694 = vadd.xlane.f32.xlu1 %v693_v54  ;;  %v699_v57 = vsel %vm534_vm0, %v683_v53, 0.0  ;;  %v819_v53 = vand.u32 127, %v714_v0 }
 0x132   : > { %v3806_v58 = vpop.eup %3805  ;;  %700 = vadd.xlane.f32.xlu0 %v699_v57  ;;  %v686_v61 = vmul.f32 %v3804_v56, %v3474_v37 }
 0x133   : > { %v685_v59 = vmul.f32 %v3806_v58, %v3474_v37  ;;  %v4328_v56 = vsub.s32 %v819_v53, %v4192_v7 }
 0x134   : > { %v708_v63 = vsel %vm534_vm0, %v686_v61, 0.0 }
 0x135   : > { %703 = vadd.xlane.f32.xlu1 %v702_v60  ;;  %v705_v62 = vsel %vm534_vm0, %v685_v59, 0.0 }
 0x136   : > { %706 = vadd.xlane.f32.xlu0 %v705_v62 }
 0x139   : > { %709 = vadd.xlane.f32.xlu1 %v708_v63 }
 0x14a   : > { %768 = vbcast.lane.b32.xlu1 %v766_v4, 256 }
 0x14c   : > { %761 = vbcast.lane.b32.xlu0 %v759_v5, 256 }
 0x1b6   : > { %v692_v23 = vpop.xlane.xlu0 %691 }
 0x1b7   : > { %v4308_v25 = vadd.f32 %v727_v8, %v692_v23 }
 0x1b9   : > { %798 = vperm.xlu1 %3789, %v4308_v25  }
 0x1ba   : > { %v689_v29 = vpop.xlane.xlu0 %688  ;;  %v698_v37 = vpop.xlane.xlu1 %697 }
 0x1bb   : > { %v778_v38 = vadd.f32 %v720_v10, %v689_v29  ;;  %v4311_v41 = vadd.f32 %v741_v18, %v698_v37 }
 0x1bd   : > { %795 = vperm.xlu0 %3790, %v778_v38  }
 0x1be   : > { %v695_v39 = vpop.xlane.xlu1 %694 }
 0x1bf   : > { %v780_v13 = vadd.f32 %v734_v9, %v695_v39  ;;  %v701_v43 = vpop.xlane.xlu0 %700 }
 0x1c0   : > { %v4314_v45 = vadd.f32 %v748_v19, %v701_v43 }
 0x1c1   : > { %801 = vperm.xlu1 %3789, %v780_v13   ;;  %804 = vperm.xlu0 %3790, %v4311_v41  }
 0x1c2   : > { %v704_v44 = vpop.xlane.xlu1 %703 }
 0x1c3   : > { %v4316_v46 = vadd.f32 %v755_v20, %v704_v44  ;;  %v707_v47 = vpop.xlane.xlu0 %706 }
 0x1c5   : > { %807 = vperm.xlu1 %3789, %v4314_v45   ;;  %810 = vperm.xlu0 %3790, %v4316_v46  }
 0x1c6   : > { %v710_v48 = vpop.xlane.xlu1 %709 }
 0x1c7   : > { %v762_v49 = vpop.permute.xlu0 %761 }
 0x1c8   : > { %v4320_v50 = vadd.f32 %v762_v49, %v707_v47 }
 0x1ca   : > { %v769_v51 = vpop.permute.xlu1 %768  ;;  %813 = vperm.xlu1 %3789, %v4320_v50  }
 0x1cb   : > { %v4323_v52 = vadd.f32 %v769_v51, %v710_v48 }
 0x1cd   : > { %816 = vperm.xlu0 %3790, %v4323_v52  }
 0x238   : > { %v799_v54 = vpop.permute.xlu1 %798 }
 0x239   : > { %v827_v61 = vrot.slane %v799_v54, %v4328_v56 }
 0x23c   : > { %v796_v55 = vpop.permute.xlu0 %795 }
 0x23d   : > { %v823_v59 = vrot.slane %v796_v55, %v4328_v56 }
 0x23f   : > { %v853_v63 = vsel %vm852_vm1, %v827_v61, %v823_v59 }
 0x240   : > { %v802_v57 = vpop.permute.xlu1 %801  ;;  %v805_v58 = vpop.permute.xlu0 %804 }
 0x241   : > { %v831_v60 = vrot.slane %v802_v57, %v4328_v56  ;;  %v835_v0 = vrot.slane %v805_v58, %v4328_v56 }
 0x243   : > { %v855_v1 = vsel %vm854_vm2, %v831_v60, %v853_v63 }
 0x244   : > { %v808_v62 = vpop.permute.xlu1 %807  ;;  %v811_v5 = vpop.permute.xlu0 %810  ;;  %v857_v8 = vsel %vm856_vm3, %v835_v0, %v855_v1 }
 0x245   : > { %v839_v4 = vrot.slane %v808_v62, %v4328_v56  ;;  %v843_v9 = vrot.slane %v811_v5, %v4328_v56 }
 0x247   : > { %v859_v18 = vsel %vm858_vm4, %v839_v4, %v857_v8 }
 0x248   : > { %v861_v23 = vsel %vm860_vm5, %v843_v9, %v859_v18 }
 0x249   : > { %v814_v10 = vpop.permute.xlu1 %813 }
 0x24a   : > { %v847_v19 = vrot.slane %v814_v10, %v4328_v56 }
 0x24c   : > { %v817_v20 = vpop.permute.xlu0 %816  ;;  %v863_v37 = vsel %vm862_vm6, %v847_v19, %v861_v23 }
 0x24d   : > { %v851_v29 = vrot.slane %v817_v20, %v4328_v56 }
 0x24f   : > { %v865_v39 = vsel %vm864_vm7, %v851_v29, %v863_v37 }
 0x250   : > { %v868_v43 = vsel %vm867_vm8, %v865_v39, -inf }
 0x251   : > { %869 = vmax.xlane.f32.xlu1 %v868_v43 }
 0x2de   : > { %v870_v44 = vpop.xlane.xlu1 %869 }
 0x2df   : > { %v875_v47 = vrot.slane %v870_v44, %v4200_v12  ;;  %v879_v48 = vrot.slane %v870_v44, %v4197_v11  ;;  %v883_v49 = vrot.slane %v870_v44, %v4205_v14  ;;  %v887_v55 = vrot.slane %v870_v44, %v4225_v21 }
 0x2e0   : > { %v891_v59 = vrot.slane %v870_v44, %v4211_v16  ;;  %v895_v62 = vrot.slane %v870_v44, %v4242_v26 }
 0x2e1   : > { %v912_v51 = vsub.f32 %v778_v38, %v875_v47  ;;  %v913_v53 = vsub.f32 %v4308_v25, %v879_v48  ;;  %v914_v57 = vsub.f32 %v780_v13, %v883_v49  ;;  %v915_v60 = vsub.f32 %v4311_v41, %v887_v55 }
 0x2e2   : > { %v916_v63 = vsub.f32 %v4314_v45, %v891_v59  ;;  %v899_v25 = vrot.slane %v870_v44, %v4302_v3  ;;  %v917_v13 = vsub.f32 %v4316_v46, %v895_v62  ;;  %v903_v41 = vrot.slane %v870_v44, %v4299_v2 }
 0x2e3   : > { %v920_v54 = vmul.f32 1.442695, %v912_v51  ;;  %v922_v58 = vmul.f32 1.442695, %v913_v53  ;;  %v924_v61 = vmul.f32 1.442695, %v914_v57 }
 0x2e4   : > { %v926_v38 = vmul.f32 1.442695, %v915_v60  ;;  %v928_v1 = vmul.f32 1.442695, %v916_v63  ;;  %v918_v45 = vsub.f32 %v4320_v50, %v899_v25  ;;  %v930_v5 = vmul.f32 1.442695, %v917_v13 }
 0x2e5   : > { %3807 = vpow2.f32 %v920_v54  ;;  %v919_v9 = vsub.f32 %v4323_v52, %v903_v41  ;;  %v3997_v41 = vmov 0.0  }
 0x2e6   : > { %3809 = vpow2.f32 %v922_v58  ;;  %v932_v46 = vmul.f32 1.442695, %v918_v45  ;;  %3583 = vmatprep.subr.mxu1 %v3997_v41  ;;  %3585 = vmatprep.mubr.msk.f32.mxu1 %vm3998_vm9, %v3997_v41 }
 0x2e7   : > { %3811 = vpow2.f32 %v924_v61  ;;  %v934_v18 = vmul.f32 1.442695, %v919_v9  ;;  %3584 = vmatpush3.msra.mxu1 %v4185_v6  ;;  %3631 = vmatprep.mubr.msk.f32.mxu0 %vm3998_vm9, %v3997_v41 }
 0x2e8   : > { %3813 = vpow2.f32 %v926_v38  ;;  %3588 = vmatprep.subr.mxu1 %v3997_v41 }
 0x2e9   : > { %3815 = vpow2.f32 %v928_v1 }
 0x2ea   : > { %3817 = vpow2.f32 %v930_v5 }
 0x2eb   : > { %3819 = vpow2.f32 %v932_v46 }
 0x2ec   : > { %3821 = vpow2.f32 %v934_v18 }
 0x2ef   : > { %v4355_v0 = vpop.eup %3807 }
 0x2f0   : > { %945 = vperm.xlu0 %3790, %v4355_v0   ;;  %v4360_v4 = vpop.eup %3809 }
 0x2f1   : > { %v4365_v8 = vpop.eup %3811 }
 0x2f2   : > { %v3814_v10 = vpop.eup %3813 }
 0x2f3   : > { %v3816_v19 = vpop.eup %3815 }
 0x2f4   : > { %948 = vperm.xlu0 %3790, %v4360_v4   ;;  %v3818_v20 = vpop.eup %3817 }
 0x2f5   : > { %v3820_v50 = vpop.eup %3819 }
 0x2f6   : > { %v3822_v23 = vpop.eup %3821 }
 0x2f8   : > { %951 = vperm.xlu0 %3790, %v4365_v8  }
 0x2fc   : > { %954 = vperm.xlu0 %3790, %v3814_v10  }
 0x300   : > { %957 = vperm.xlu0 %3790, %v3816_v19  }
 0x304   : > { %960 = vperm.xlu0 %3790, %v3818_v20  }
 0x308   : > { %963 = vperm.xlu0 %3790, %v3820_v50  }
 0x30c   : > { %966 = vperm.xlu0 %3790, %v3822_v23  }
 0x36f   : > { %v946_v29 = vpop.permute.xlu0 %945 }
 0x370   : > { %v971_v49 = vrot.slane %v946_v29, %v4328_v56 }
 0x373   : > { %v949_v37 = vpop.permute.xlu0 %948 }
 0x374   : > { %v975_v47 = vrot.slane %v949_v37, %v4328_v56 }
 0x376   : > { %v1000_v55 = vsel %vm852_vm1, %v975_v47, %v971_v49 }
 0x377   : > { %v952_v39 = vpop.permute.xlu0 %951 }
 0x378   : > { %v979_v48 = vrot.slane %v952_v39, %v4328_v56 }
 0x37a   : > { %v1001_v58 = vsel %vm854_vm2, %v979_v48, %v1000_v55 }
 0x37b   : > { %v955_v43 = vpop.permute.xlu0 %954 }
 0x37c   : > { %v983_v51 = vrot.slane %v955_v43, %v4328_v56 }
 0x37e   : > { %v1002_v60 = vsel %vm856_vm3, %v983_v51, %v1001_v58 }
 0x37f   : > { %v958_v52 = vpop.permute.xlu0 %957 }
 0x380   : > { %v987_v53 = vrot.slane %v958_v52, %v4328_v56 }
 0x382   : > { %v1003_v61 = vsel %vm858_vm4, %v987_v53, %v1002_v60 }
 0x383   : > { %v961_v44 = vpop.permute.xlu0 %960 }
 0x384   : > { %v991_v57 = vrot.slane %v961_v44, %v4328_v56 }
 0x386   : > { %v1004_v63 = vsel %vm860_vm5, %v991_v57, %v1003_v61  ;;  %v1702_v61 = vld [vmem:[#allocation3 + $0x8] sm:$0xff] }
 0x387   : > { %v964_v54 = vpop.permute.xlu0 %963 }
 0x388   : > { %v995_v59 = vrot.slane %v964_v54, %v4328_v56 }
 0x38a   : > { %v1005_v25 = vsel %vm862_vm6, %v995_v59, %v1004_v63  ;;  %v1703_v63 = vld [vmem:[#allocation3 + $0x10] sm:$0xff] }
 0x38b   : > { %v967_v62 = vpop.permute.xlu0 %966 }
 0x38c   : > { %v999_v38 = vrot.slane %v967_v62, %v4328_v56 }
 0x38e   : > { %v1006_v13 = vsel %vm864_vm7, %v999_v38, %v1005_v25  ;;  %v1704_v38 = vld [vmem:[#allocation3 + $0x18] sm:$0xff] }
 0x38f   : > { %v1008_v1 = vsel %vm867_vm8, %v1006_v13, 0.0  ;;  %v3710_v25 = vpack.c.bf16 %v1704_v38, %v1703_v63 }
 0x390   : > { %1009 = vadd.xlane.f32.xlu0 %v1008_v1 }
 0x41d   : > { %v1010_v45 = vpop.xlane.xlu0 %1009 }
 0x41e   : > { %3823 = vrcp.f32 %v1010_v45 }
 0x428   : > { %v3824_v5 = vpop.eup %3823 }
 0x429   : > { %v1032_v9 = vrot.slane %v3824_v5, %v4211_v16  ;;  %v1016_v46 = vrot.slane %v3824_v5, %v4200_v12  ;;  %v1020_v37 = vrot.slane %v3824_v5, %v4197_v11  ;;  %v1024_v43 = vrot.slane %v3824_v5, %v4205_v14 }
 0x42a   : > { %v1036_v44 = vrot.slane %v3824_v5, %v4242_v26  ;;  %v1040_v48 = vrot.slane %v3824_v5, %v4302_v3  ;;  %v1044_v51 = vrot.slane %v3824_v5, %v4299_v2 }
 0x42b   : > { %v1057_v18 = vmul.f32 %v3816_v19, %v1032_v9  ;;  %v1053_v29 = vmul.f32 %v4355_v0, %v1016_v46  ;;  %v1054_v39 = vmul.f32 %v4360_v4, %v1020_v37  ;;  %v1055_v19 = vmul.f32 %v4365_v8, %v1024_v43 }
 0x42c   : > { %v1028_v0 = vrot.slane %v3824_v5, %v4225_v21  ;;  %v1058_v47 = vmul.f32 %v3818_v20, %v1036_v44  ;;  %v1059_v49 = vmul.f32 %v3820_v50, %v1040_v48  ;;  %v1060_v4 = vmul.f32 %v3822_v23, %v1044_v51 }
 0x42d   : > { %1383 = vperm.xlu0 %3790, %v1057_v18   ;;  %1063 = vperm.xlu1 %3789, %v1053_v29  }
 0x42e   : > { %v1056_v52 = vmul.f32 %v3814_v10, %v1028_v0 }
 0x431   : > { %1143 = vperm.xlu1 %3789, %v1054_v39  }
 0x435   : > { %1223 = vperm.xlu1 %3789, %v1055_v19  }
 0x439   : > { %1303 = vperm.xlu1 %3789, %v1056_v52  }
 0x43d   : > { %1463 = vperm.xlu1 %3789, %v1058_v47  }
 0x441   : > { %1543 = vperm.xlu1 %3789, %v1059_v49  }
 0x445   : > { %1623 = vperm.xlu1 %3789, %v1060_v4  }
 0x4ac   : > { %v1064_v53 = vpop.permute.xlu1 %1063  ;;  %v1384_v55 = vpop.permute.xlu0 %1383 }
 0x4ad   : > { %v1068_v8 = vrot.slane %v1064_v53, %v4328_v56  ;;  %v1388_v58 = vrot.slane %v1384_v55, %v4328_v56 }
 0x4af   : > { %3586 = vmatmul.mubr.msk.f32.vlgmr.msra.gmra.mrb[0].mxu1 %vm867_vm8, %v1068_v8 }
 0x4b0   : > { %3589 = vmatpush3.msra.mxu1 %v4208_v15  ;;  %v1144_v10 = vpop.permute.xlu1 %1143  ;;  %3590 = vmatprep.mubr.msk.f32.mxu1 %vm3998_vm9, %v3997_v41 }
 0x4b1   : > { %v1148_v20 = vrot.slane %v1144_v10, %v4328_v56  ;;  %3593 = vmatprep.subr.mxu1 %v3997_v41 }
 0x4b3   : > { %3591 = vmatmul.mubr.msk.f32.vlgmr.msra.gmra.mrb[2].mxu1 %vm867_vm8, %v1148_v20 }
 0x4b4   : > { %3594 = vmatpush3.msra.mxu1 %v4214_v17  ;;  %v1224_v50 = vpop.permute.xlu1 %1223  ;;  %3595 = vmatprep.mubr.msk.f32.mxu1 %vm3998_vm9, %v3997_v41 }
 0x4b5   : > { %v1228_v23 = vrot.slane %v1224_v50, %v4328_v56  ;;  %3598 = vmatprep.subr.mxu1 %v3997_v41 }
 0x4b7   : > { %3596 = vmatmul.mubr.msk.f32.vlgmr.msra.gmra.mrb[4].mxu1 %vm867_vm8, %v1228_v23 }
 0x4b8   : > { %3599 = vmatpush3.msra.mxu1 %v4230_v22  ;;  %v1304_v15 = vpop.permute.xlu1 %1303  ;;  %3600 = vmatprep.mubr.msk.f32.mxu1 %vm3998_vm9, %v3997_v41 }
 0x4b9   : > { %v1308_v54 = vrot.slane %v1304_v15, %v4328_v56  ;;  %3603 = vmatprep.subr.mxu1 %v3997_v41 }
 0x4bb   : > { %3601 = vmatmul.mubr.msk.f32.vlgmr.msra.gmra.mrb[6].mxu1 %vm867_vm8, %v1308_v54 }
 0x4bc   : > { %3604 = vmatpush3.msra.mxu1 %v4235_v24  ;;  %v1464_v57 = vpop.permute.xlu1 %1463  ;;  %3605 = vmatprep.mubr.msk.f32.mxu1 %vm3998_vm9, %v3997_v41 }
 0x4bd   : > { %3608 = vmatprep.subr.mxu1 %v3997_v41  ;;  %v1468_v59 = vrot.slane %v1464_v57, %v4328_v56  ;;  %v4473_v57 = vld [vmem:[%s4796_s7] ss:$0 sm:$0xff] }
 0x4bf   : > { %3606 = vmatmul.mubr.msk.f32.vlgmr.msra.gmra.mrb[8].mxu1 %vm867_vm8, %v1388_v58 }
 0x4c0   : > { %3609 = vmatpush3.msra.mxu1 %v4247_v27  ;;  %v1544_v22 = vpop.permute.xlu1 %1543  ;;  %3610 = vmatprep.mubr.msk.f32.mxu1 %vm3998_vm9, %v3997_v41 }
 0x4c1   : > { %3613 = vmatprep.subr.mxu1 %v3997_v41  ;;  %v1548_v24 = vrot.slane %v1544_v22, %v4328_v56 }
 0x4c3   : > { %3611 = vmatmul.mubr.msk.f32.vlgmr.msra.gmra.mrb[10].mxu1 %vm867_vm8, %v1468_v59 }
 0x4c4   : > { %3614 = vmatpush3.msra.mxu1 %v4250_v28  ;;  %3615 = vmatprep.mubr.msk.f32.mxu1 %vm3998_vm9, %v3997_v41  ;;  %v1624_v27 = vpop.permute.xlu1 %1623  ;;  %v3999_v28 = vmov 0.0|0.0  }
 0x4c5   : > { %3618 = vmatprep.subr.mxu1 %v3997_v41  ;;  %v1628_v60 = vrot.slane %v1624_v27, %v4328_v56  ;;  %3706 = vmatprep.subr.bf16.mxu0 %v3999_v28 }
 0x4c7   : > { %3616 = vmatmul.mubr.msk.f32.vlgmr.msra.gmra.mrb[12].mxu1 %vm867_vm8, %v1548_v24 }
 0x4c8   : > { %3619 = vmatpush3.msra.mxu1 %v4259_v30  ;;  %3620 = vmatprep.mubr.msk.f32.mxu1 %vm3998_vm9, %v3997_v41  ;;  %v1701_v30 = vld [vmem:[#allocation3] sm:$0xff] }
 0x4c9   : > { %3634 = vmatprep.subr.mxu1 %v3997_v41  ;;  %v3707_v62 = vpack.c.bf16 %v1702_v61, %v1701_v30 }
 0x4cb   : > { %3621 = vmatmul.mubr.msk.f32.vlgmr.msra.gmra.mrb[14].mxu1 %vm867_vm8, %v1628_v60  ;;  %3708 = vmatpush3.bf16.msra.mxu0 %v3707_v62 }
 0x4cc   : > { %3635 = vmatpush3.msra.mxu1 %v4185_v6  ;;  %3636 = vmatprep.mubr.msk.f32.mxu1 %vm3998_vm9, %v3997_v41  ;;  %v529_v6 = vld [vmem:[%s518_s29] sm:$0xff]  ;;  %s4004_s29 = smov [#allocation7]  }
 0x4cd   : > { %3639 = vmatprep.subr.mxu1 %v3997_v41  ;;  %3709 = vmatprep.subr.bf16.mxu0 %v3999_v28  ;;  %v1916_v13 = vrot.slane %v529_v6, %v4200_v12  ;;  %v1937_v1 = vrot.slane %v529_v6, %v4225_v21  ;;  %v1923_v45 = vrot.slane %v529_v6, %v4197_v11  ;;  %s3897_s18 = sshll.u32 %s4004_s29, 4  ;;  %s3898_s18 = int_to_ptr.vmem [resolvable:$false] %s3897_s18 }
 0x4ce   : > { %v1951_v5 = vrot.slane %v529_v6, %v4242_v26  ;;  %v1930_v9 = vrot.slane %v529_v6, %v4205_v14  ;;  %v1965_v46 = vrot.slane %v529_v6, %v4299_v2  ;;  %v1944_v18 = vrot.slane %v529_v6, %v4211_v16 }
 0x4cf   : > { %3711 = vmatpush3.bf16.msra.mxu0 %v3710_v25  ;;  %1918 = vbcast.lane.b32.xlu1 %v1916_v13, 256  ;;  %v1958_v29 = vrot.slane %v529_v6, %v4302_v3 }
 0x4d0   : > { %3644 = vmatprep.subr.mxu0 %v3997_v41  ;;  %1939 = vbcast.lane.b32.xlu0 %v1937_v1, 256 }
 0x4d3   : > { %1925 = vbcast.lane.b32.xlu1 %v1923_v45, 256 }
 0x4d4   : > { %1953 = vbcast.lane.b32.xlu0 %v1951_v5, 256 }
 0x4d7   : > { %1932 = vbcast.lane.b32.xlu1 %v1930_v9, 256 }
 0x4d8   : > { %1967 = vbcast.lane.b32.xlu0 %v1965_v46, 256 }
 0x4db   : > { %1946 = vbcast.lane.b32.xlu1 %v1944_v18, 256  ;;  %v4001_v18 = vmov 1966171168  }
 0x4df   : > { %1960 = vbcast.lane.b32.xlu1 %v1958_v29, 256  ;;  %v1802_v29 = vunpack.c.l.s4 %v4001_v18 }
 0x541   : > { %v1919_v58 = vpop.permute.xlu1 %1918 }
 0x542   : > { %v1976_v59 = vmul.f32 %v4473_v57, %v1919_v58  ;;  %v1940_v13 = vpop.permute.xlu0 %1939 }
 0x543   : > { %v1979_v5 = vmul.f32 %v4473_v57, %v1940_v13 }
 0x544   : > { %1992 = vrot.lane.b32.xlu1 %v1976_v59, %s4000_s24 }
 0x545   : > { %v1926_v30 = vpop.permute.xlu1 %1925 }
 0x546   : > { %v1977_v62 = vmul.f32 %v4473_v57, %v1926_v30 }
 0x548   : > { %1994 = vrot.lane.b32.xlu0 %v1977_v62, %s4000_s24 }
 0x549   : > { %v1933_v6 = vpop.permute.xlu1 %1932 }
 0x54a   : > { %v1978_v45 = vmul.f32 %v4473_v57, %v1933_v6  ;;  %v3485_v6 = vld [vmem:[%s4797_s8] ss:$0 sm:$0xff] }
 0x54c   : > { %1996 = vrot.lane.b32.xlu0 %v1978_v45, %s4000_s24 }
 0x54d   : > { %v1947_v9 = vpop.permute.xlu1 %1946 }
 0x54e   : > { %v1980_v46 = vmul.f32 %v4473_v57, %v1947_v9 }
 0x550   : > { %1998 = vrot.lane.b32.xlu0 %v1979_v5, %s4000_s24 }
 0x551   : > { %v1961_v62 = vpop.permute.xlu1 %1960 }
 0x554   : > { %2000 = vrot.lane.b32.xlu0 %v1980_v46, %s4000_s24 }
 0x582   : > { %v1137_v37 = vpop.f32.mrb[0].mxu1 }
 0x583   : > { %v3587_v39 = vpop.f32.mrb[1].mxu1 }
 0x586   : > { %v1217_v43 = vpop.f32.mrb[2].mxu1 }
 0x587   : > { %v1713_v19 = vrot.slane %v1217_v43, 7  ;;  %v3592_v0 = vpop.f32.mrb[3].mxu1 }
 0x589   : > { %v1714_v52 = vsel %vm852_vm1, %v1713_v19, %v1137_v37  ;;  %v1803_v37 = vunpack.c.0.s8 %v1802_v29 }
 0x58a   : > { %v1297_v44 = vpop.f32.mrb[4].mxu1 }
 0x58b   : > { %v1715_v47 = vrot.slane %v1297_v44, 6  ;;  %v3597_v48 = vpop.f32.mrb[5].mxu1  ;;  %v1806_v39 = vsub.s32 %v1803_v37, %v4192_v7 }
 0x58d   : > { %v1716_v49 = vsel %vm854_vm2, %v1715_v47, %v1714_v52 }
 0x58e   : > { %v1377_v51 = vpop.f32.mrb[6].mxu1 }
 0x58f   : > { %v1717_v4 = vrot.slane %v1377_v51, 5  ;;  %v3602_v53 = vpop.f32.mrb[7].mxu1 }
 0x591   : > { %v1718_v8 = vsel %vm856_vm3, %v1717_v4, %v1716_v49 }
 0x592   : > { %v1457_v10 = vpop.f32.mrb[8].mxu1 }
 0x593   : > { %v1719_v20 = vrot.slane %v1457_v10, 4  ;;  %v3607_v50 = vpop.f32.mrb[9].mxu1 }
 0x595   : > { %v1720_v23 = vsel %vm858_vm4, %v1719_v20, %v1718_v8  ;;  %v1954_v20 = vpop.permute.xlu0 %1953 }
 0x596   : > { %v1537_v15 = vpop.f32.mrb[10].mxu1 }
 0x597   : > { %v1721_v54 = vrot.slane %v1537_v15, 3  ;;  %v3612_v55 = vpop.f32.mrb[11].mxu1 }
 0x599   : > { %v1722_v22 = vsel %vm860_vm5, %v1721_v54, %v1720_v23  ;;  %v1981_v23 = vmul.f32 %v4473_v57, %v1954_v20  ;;  %v1968_v55 = vpop.permute.xlu0 %1967 }
 0x59a   : > { %v1617_v24 = vpop.f32.mrb[12].mxu1  ;;  %v1983_v58 = vmul.f32 %v4473_v57, %v1968_v55 }
 0x59b   : > { %v1723_v27 = vrot.slane %v1617_v24, 2  ;;  %v3617_v60 = vpop.f32.mrb[13].mxu1  ;;  %v528_v24 = vld [vmem:[%s514_s6] sm:$0xff]  ;;  %s4003_s6 = smov 112  }
 0x59d   : > { %v1724_v61 = vsel %vm862_vm6, %v1723_v27, %v1722_v22  ;;  %v2105_v27 = vsub.f32 1.0, %v528_v24 }
 0x59e   : > { %v1697_v63 = vpop.f32.mrb[14].mxu1 }
 0x59f   : > { %v1725_v38 = vrot.slane %v1697_v63, 1  ;;  %v3622_v25 = vpop.f32.mrb[15].mxu1 }
 0x5a0   : > { %v1982_v25 = vmul.f32 %v4473_v57, %v1961_v62 }
 0x5a1   : > { %v4482_v1 = vsel %vm864_vm7, %v1725_v38, %v1724_v61  ;;  %v4518_v61 = vmul.f32 -10000.0, %v2105_v27 }
 0x5a2   : > { %3632 = vmatmul.mubr.msk.f32.vlgmr.msra.gmra.mrb[8].mxu0 %vm534_vm0, %v4482_v1 }
 0x5a3   : > { %3645 = vmatpush3.msra.mxu0 %v4214_v17  ;;  %3646 = vmatprep.mubr.msk.f32.mxu0 %vm3998_vm9, %v3997_v41  ;;  %v2111_v63 = vrot.slane %v4518_v61, %v4200_v12  ;;  %v2118_v13 = vrot.slane %v4518_v61, %v4197_v11 }
 0x5a4   : > { %3654 = vmatprep.subr.mxu0 %v3997_v41 }
 0x5b6   : > { %v1993_v46 = vpop.permute.xlu1 %1992 }
 0x5ba   : > { %v1995_v45 = vpop.permute.xlu0 %1994 }
 0x5be   : > { %v1997_v5 = vpop.permute.xlu0 %1996 }
 0x5c2   : > { %v1999_v9 = vpop.permute.xlu0 %1998 }
 0x5c6   : > { %v2001_v18 = vpop.permute.xlu0 %2000 }
 0x675   : > { %v1795_v43 = vpop.f32.mrb[8].mxu0 }
 0x676   : > { %v1807_v19 = vrot.slane %v1795_v43, %v1806_v39  ;;  %v3633_v17 = vpop.f32.mrb[9].mxu0  ;;  %v1800_v0 = vcombine.high %v1795_v43, %v1795_v43 }
 0x678   : > { %v1815_v52 = vcombine.high %v1807_v19, %v1807_v19  ;;  %v1823_v44 = vrot.slane %v1807_v19, %v1806_v39  ;;  %v1814_v48 = vrot.slane %v1800_v0, %v1806_v39 }
 0x67a   : > { %v1837_v47 = vrot.slane %v1815_v52, %v1806_v39  ;;  %v1845_v49 = vcombine.high %v1823_v44, %v1823_v44  ;;  %v1852_v51 = vrot.slane %v1823_v44, %v4200_v12  ;;  %v1816_v8 = vcombine.high %v1814_v48, %v1814_v48 }
 0x67b   : > { %v1830_v7 = vrot.slane %v1814_v48, %v1806_v39 }
 0x67c   : > { %v1856_v4 = vrot.slane %v1837_v47, %v4200_v12  ;;  %v1847_v53 = vcombine.high %v1837_v47, %v1837_v47  ;;  %1881 = vrot.lane.b32.xlu1 %v1852_v51, %s4000_s24  ;;  %v1860_v10 = vrot.slane %v1845_v49, %v4200_v12  ;;  %v1844_v54 = vrot.slane %v1816_v8, %v1806_v39 }
 0x67d   : > { %v1868_v15 = vrot.slane %v1830_v7, %v4200_v12  ;;  %v1846_v59 = vcombine.high %v1830_v7, %v1830_v7 }
 0x67e   : > { %1883 = vrot.lane.b32.xlu0 %v1856_v4, %s4000_s24  ;;  %v1864_v50 = vrot.slane %v1847_v53, %v4200_v12  ;;  %v1872_v22 = vrot.slane %v1844_v54, %v4200_v12  ;;  %v1848_v30 = vcombine.high %v1844_v54, %v1844_v54 }
 0x67f   : > { %v1876_v60 = vrot.slane %v1846_v59, %v4200_v12 }
 0x680   : > { %1885 = vrot.lane.b32.xlu1 %v1860_v10, %s4000_s24  ;;  %v1880_v38 = vrot.slane %v1848_v30, %v4200_v12 }
 0x682   : > { %1887 = vrot.lane.b32.xlu0 %v1864_v50, %s4000_s24 }
 0x684   : > { %1889 = vrot.lane.b32.xlu1 %v1868_v15, %s4000_s24 }
 0x686   : > { %2002 = vrot.lane.b32.xlu0 %v1981_v23, %s4000_s24 }
 0x688   : > { %1891 = vrot.lane.b32.xlu1 %v1872_v22, %s4000_s24 }
 0x68a   : > { %2006 = vrot.lane.b32.xlu0 %v1983_v58, %s4000_s24 }
 0x68c   : > { %1893 = vrot.lane.b32.xlu1 %v1876_v60, %s4000_s24 }
 0x68e   : > { %2113 = vbcast.lane.b32.xlu0 %v2111_v63, 256 }
 0x690   : > { %1895 = vrot.lane.b32.xlu1 %v1880_v38, %s4000_s24 }
 0x694   : > { %2004 = vrot.lane.b32.xlu1 %v1982_v25, %s4000_s24 }
 0x698   : > { %2038 = vrot.lane.b32.xlu1 %v3485_v6, %s4000_s24  ;;  %v2125_v6 = vrot.slane %v4518_v61, %v4205_v14 }
 0x69c   : > { %2120 = vbcast.lane.b32.xlu1 %v2118_v13, 256  ;;  %v2139_v13 = vrot.slane %v4518_v61, %v4211_v16 }
 0x6ee   : > { %v1882_v29 = vpop.permute.xlu1 %1881 }
 0x6ef   : > { %v1905_v43 = vadd.f32 %v1882_v29, %v4266_v32 }
 0x6f0   : > { %v1884_v57 = vpop.permute.xlu0 %1883 }
 0x6f1   : > { %v1906_v19 = vadd.f32 %v4263_v31, %v1884_v57  ;;  %v2016_v52 = vadd.f32 %v1993_v46, %v1905_v43 }
 0x6f2   : > { %v1886_v37 = vpop.permute.xlu1 %1885 }
 0x6f3   : > { %v1907_v44 = vadd.f32 %v1886_v37, %v4272_v34  ;;  %v2017_v47 = vadd.f32 %v1995_v45, %v1906_v19  ;;  %3825 = vtanh.f32 %v2016_v52  ;;  %v2132_v45 = vrot.slane %v4518_v61, %v4225_v21 }
 0x6f4   : > { %v1888_v17 = vpop.permute.xlu0 %1887 }
 0x6f5   : > { %v1908_v48 = vadd.f32 %v4269_v33, %v1888_v17  ;;  %v2018_v53 = vadd.f32 %v1997_v5, %v1907_v44  ;;  %3827 = vtanh.f32 %v2017_v47  ;;  %v2146_v5 = vrot.slane %v4518_v61, %v4242_v26 }
 0x6f6   : > { %v1890_v39 = vpop.permute.xlu1 %1889 }
 0x6f7   : > { %v2019_v8 = vadd.f32 %v1999_v9, %v1908_v48  ;;  %v1909_v32 = vadd.f32 %v1890_v39, %v4278_v36  ;;  %3829 = vtanh.f32 %v2018_v53  ;;  %v2160_v53 = vrot.slane %v4518_v61, %v4299_v2 }
 0x6f8   : > { %v2003_v51 = vpop.permute.xlu0 %2002 }
 0x6f9   : > { %3831 = vtanh.f32 %v2019_v8  ;;  %v2020_v34 = vadd.f32 %v2001_v18, %v1909_v32  ;;  %v2153_v8 = vrot.slane %v4518_v61, %v4302_v3 }
 0x6fa   : > { %v1892_v0 = vpop.permute.xlu1 %1891 }
 0x6fb   : > { %v1910_v49 = vadd.f32 %v4275_v35, %v1892_v0 }
 0x6fc   : > { %v2007_v10 = vpop.permute.xlu0 %2006 }
 0x6fd   : > { %v2021_v7 = vadd.f32 %v2003_v51, %v1910_v49  ;;  %v3826_v15 = vpop.eup %3825 }
 0x6fe   : > { %v1894_v4 = vpop.permute.xlu1 %1893 }
 0x6ff   : > { %v1911_v33 = vadd.f32 %v1894_v4, %v4287_v42  ;;  %3833 = vtanh.f32 %v2021_v7  ;;  %v3828_v54 = vpop.eup %3827 }
 0x700   : > { %3835 = vtanh.f32 %v2020_v34  ;;  %v2114_v9 = vpop.permute.xlu0 %2113 }
 0x701   : > { %v3830_v22 = vpop.eup %3829 }
 0x702   : > { %v1896_v31 = vpop.permute.xlu1 %1895 }
 0x703   : > { %v1912_v20 = vadd.f32 %v4284_v40, %v1896_v31  ;;  %v3832_v40 = vpop.eup %3831 }
 0x705   : > { %v2023_v50 = vadd.f32 %v2007_v10, %v1912_v20 }
 0x706   : > { %v2005_v35 = vpop.permute.xlu1 %2004 }
 0x707   : > { %v2022_v23 = vadd.f32 %v2005_v35, %v1911_v33  ;;  %3837 = vtanh.f32 %v2023_v50 }
 0x709   : > { %3839 = vtanh.f32 %v2022_v23  ;;  %v3834_v42 = vpop.eup %3833 }
 0x70a   : > { %v2039_v36 = vpop.permute.xlu1 %2038  ;;  %v3836_v27 = vpop.eup %3835 }
 0x70b   : > { %v2042_v55 = vmul.f32 %v3828_v54, %v2039_v36  ;;  %v2041_v58 = vmul.f32 %v3826_v15, %v2039_v36  ;;  %v2044_v59 = vmul.f32 %v3832_v40, %v2039_v36  ;;  %v2043_v24 = vmul.f32 %v3830_v22, %v2039_v36 }
 0x70c   : > { %v2046_v30 = vmul.f32 %v3834_v42, %v2039_v36  ;;  %v2045_v62 = vmul.f32 %v3836_v27, %v2039_v36 }
 0x70d   : > { %2059 = vrot.lane.b32.xlu1 %v2042_v55, %s4002_s16  ;;  %2057 = vrot.lane.b32.xlu0 %v2041_v58, %s4002_s16 }
 0x70e   : > { %v2121_v46 = vpop.permute.xlu1 %2120 }
 0x711   : > { %2063 = vrot.lane.b32.xlu1 %v2044_v59, %s4002_s16  ;;  %2061 = vrot.lane.b32.xlu0 %v2043_v24, %s4002_s16  ;;  %v3838_v60 = vpop.eup %3837 }
 0x712   : > { %v2048_v38 = vmul.f32 %v3838_v60, %v2039_v36 }
 0x713   : > { %v3840_v63 = vpop.eup %3839 }
 0x714   : > { %v2047_v25 = vmul.f32 %v3840_v63, %v2039_v36 }
 0x715   : > { %2067 = vrot.lane.b32.xlu1 %v2046_v30, %s4002_s16  ;;  %2065 = vrot.lane.b32.xlu0 %v2045_v62, %s4002_s16 }
 0x719   : > { %2071 = vrot.lane.b32.xlu1 %v2048_v38, %s4002_s16  ;;  %2069 = vrot.lane.b32.xlu0 %v2047_v25, %s4002_s16  ;;  %s4807_s16 = sshll.u32 %s4100_s11, 7 }
 0x71a   : > { %s4707_s21 = scalar_lea.hbm %s4802_s13, %s4807_s16  ;;  %s3899_s16 = scalar_lea.vmem %s3898_s18, 256 }
 0x71d   : > { %2127 = vbcast.lane.b32.xlu1 %v2125_v6, 256  ;;  %2141 = vbcast.lane.b32.xlu0 %v2139_v13, 256 }
 0x721   : > { %2134 = vbcast.lane.b32.xlu1 %v2132_v45, 256 }
 0x725   : > { %2148 = vbcast.lane.b32.xlu1 %v2146_v5, 256 }
 0x77f   : > { %v2058_v18 = vpop.permute.xlu0 %2057  ;;  %v2060_v29 = vpop.permute.xlu1 %2059 }
 0x780   : > { %v2081_v37 = vsel %vm534_vm0, %v2058_v18, 0.0  ;;  %v2084_v57 = vsel %vm534_vm0, %v2060_v29, 0.0 }
 0x781   : > { %2082 = vadd.xlane.f32.xlu0 %v2081_v37  ;;  %2085 = vadd.xlane.f32.xlu1 %v2084_v57 }
 0x783   : > { %v2062_v39 = vpop.permute.xlu0 %2061  ;;  %v2064_v43 = vpop.permute.xlu1 %2063 }
 0x784   : > { %v2087_v19 = vsel %vm534_vm0, %v2062_v39, 0.0  ;;  %v2090_v48 = vsel %vm534_vm0, %v2064_v43, 0.0 }
 0x785   : > { %2088 = vadd.xlane.f32.xlu0 %v2087_v19 }
 0x787   : > { %v2066_v17 = vpop.permute.xlu0 %2065  ;;  %v2068_v0 = vpop.permute.xlu1 %2067 }
 0x788   : > { %v2093_v52 = vsel %vm534_vm0, %v2066_v17, 0.0  ;;  %v2096_v44 = vsel %vm534_vm0, %v2068_v0, 0.0 }
 0x789   : > { %2094 = vadd.xlane.f32.xlu0 %v2093_v52  ;;  %2097 = vadd.xlane.f32.xlu1 %v2096_v44 }
 0x78b   : > { %v2072_v47 = vpop.permute.xlu1 %2071  ;;  %v2070_v51 = vpop.permute.xlu0 %2069 }
 0x78c   : > { %v2102_v49 = vsel %vm534_vm0, %v2072_v47, 0.0  ;;  %v2099_v4 = vsel %vm534_vm0, %v2070_v51, 0.0 }
 0x78d   : > { %2091 = vadd.xlane.f32.xlu0 %v2090_v48  ;;  %2103 = vadd.xlane.f32.xlu1 %v2102_v49 }
 0x78f   : > { %v2128_v32 = vpop.permute.xlu1 %2127  ;;  %v2142_v31 = vpop.permute.xlu0 %2141 }
 0x791   : > { %2100 = vadd.xlane.f32.xlu0 %v2099_v4 }
 0x793   : > { %v2135_v7 = vpop.permute.xlu1 %2134 }
 0x797   : > { %v2149_v10 = vpop.permute.xlu1 %2148 }
 0x79e   : > { %2162 = vbcast.lane.b32.xlu1 %v2160_v53, 256 }
 0x7a7   : > { %2155 = vbcast.lane.b32.xlu0 %v2153_v8, 256 }
 0x80e   : > { %v2083_v20 = vpop.xlane.xlu0 %2082  ;;  %v2086_v34 = vpop.xlane.xlu1 %2085 }
 0x80f   : > { %v2172_v33 = vadd.f32 %v2114_v9, %v2083_v20  ;;  %v2173_v50 = vadd.f32 %v2121_v46, %v2086_v34 }
 0x811   : > { %2189 = vperm.xlu0 %3790, %v2172_v33   ;;  %2192 = vperm.xlu1 %3789, %v2173_v50  }
 0x812   : > { %v2089_v35 = vpop.xlane.xlu0 %2088 }
 0x813   : > { %v2174_v23 = vadd.f32 %v2128_v32, %v2089_v35 }
 0x815   : > { %2195 = vperm.xlu0 %3790, %v2174_v23  }
 0x816   : > { %v2095_v15 = vpop.xlane.xlu0 %2094  ;;  %v2098_v54 = vpop.xlane.xlu1 %2097 }
 0x817   : > { %v2176_v36 = vadd.f32 %v2142_v31, %v2095_v15  ;;  %v2177_v40 = vadd.f32 %v2149_v10, %v2098_v54 }
 0x819   : > { %2201 = vperm.xlu0 %3790, %v2176_v36  }
 0x81a   : > { %v2092_v55 = vpop.xlane.xlu0 %2091  ;;  %v2104_v61 = vpop.xlane.xlu1 %2103 }
 0x81b   : > { %v2175_v58 = vadd.f32 %v2135_v7, %v2092_v55 }
 0x81d   : > { %2198 = vperm.xlu1 %3789, %v2175_v58  }
 0x81e   : > { %v2101_v22 = vpop.xlane.xlu0 %2100  ;;  %v2163_v59 = vpop.permute.xlu1 %2162 }
 0x81f   : > { %v2179_v42 = vadd.f32 %v2163_v59, %v2104_v61 }
 0x821   : > { %2204 = vperm.xlu1 %3789, %v2177_v40  }
 0x822   : > { %v2156_v24 = vpop.permute.xlu0 %2155 }
 0x823   : > { %v2178_v27 = vadd.f32 %v2156_v24, %v2101_v22 }
 0x825   : > { %2207 = vperm.xlu0 %3790, %v2178_v27   ;;  %2210 = vperm.xlu1 %3789, %v2179_v42  }
 0x890   : > { %v2190_v60 = vpop.permute.xlu0 %2189  ;;  %v2193_v30 = vpop.permute.xlu1 %2192 }
 0x891   : > { %v2215_v63 = vrot.slane %v2190_v60, %v4328_v56  ;;  %v2219_v38 = vrot.slane %v2193_v30, %v4328_v56 }
 0x893   : > { %v2244_v45 = vsel %vm852_vm1, %v2219_v38, %v2215_v63 }
 0x894   : > { %v2196_v62 = vpop.permute.xlu0 %2195 }
 0x895   : > { %v2223_v6 = vrot.slane %v2196_v62, %v4328_v56 }
 0x897   : > { %v2245_v46 = vsel %vm854_vm2, %v2223_v6, %v2244_v45 }
 0x898   : > { %v2202_v5 = vpop.permute.xlu0 %2201 }
 0x899   : > { %v2231_v37 = vrot.slane %v2202_v5, %v4328_v56 }
 0x89c   : > { %v2199_v25 = vpop.permute.xlu1 %2198 }
 0x89d   : > { %v2227_v13 = vrot.slane %v2199_v25, %v4328_v56 }
 0x89f   : > { %v2246_v18 = vsel %vm856_vm3, %v2227_v13, %v2245_v46 }
 0x8a0   : > { %v2205_v9 = vpop.permute.xlu1 %2204  ;;  %v2247_v43 = vsel %vm858_vm4, %v2231_v37, %v2246_v18 }
 0x8a1   : > { %v2235_v29 = vrot.slane %v2205_v9, %v4328_v56 }
 0x8a3   : > { %v2248_v0 = vsel %vm860_vm5, %v2235_v29, %v2247_v43 }
 0x8a4   : > { %v2208_v57 = vpop.permute.xlu0 %2207  ;;  %v2211_v39 = vpop.permute.xlu1 %2210 }
 0x8a5   : > { %v2239_v19 = vrot.slane %v2208_v57, %v4328_v56  ;;  %v2243_v17 = vrot.slane %v2211_v39, %v4328_v56 }
 0x8a7   : > { %v2249_v52 = vsel %vm862_vm6, %v2239_v19, %v2248_v0 }
 0x8a8   : > { %v2250_v44 = vsel %vm864_vm7, %v2243_v17, %v2249_v52 }
 0x8a9   : > { %v2252_v47 = vsel %vm867_vm8, %v2250_v44, -inf }
 0x8aa   : > { %2253 = vmax.xlane.f32.xlu0 %v2252_v47 }
 0x937   : > { %v2254_v48 = vpop.xlane.xlu0 %2253 }
 0x938   : > { %v2259_v49 = vrot.slane %v2254_v48, %v4200_v12  ;;  %v2263_v51 = vrot.slane %v2254_v48, %v4197_v11  ;;  %v2287_v4 = vrot.slane %v2254_v48, %v4299_v2  ;;  %v2267_v53 = vrot.slane %v2254_v48, %v4205_v14 }
 0x939   : > { %v2271_v10 = vrot.slane %v2254_v48, %v4225_v21  ;;  %v2275_v15 = vrot.slane %v2254_v48, %v4211_v16  ;;  %v2279_v61 = vrot.slane %v2254_v48, %v4242_v26  ;;  %v2283_v59 = vrot.slane %v2254_v48, %v4302_v3 }
 0x93a   : > { %v2296_v8 = vsub.f32 %v2172_v33, %v2259_v49  ;;  %v2297_v32 = vsub.f32 %v2173_v50, %v2263_v51  ;;  %v2303_v31 = vsub.f32 %v2179_v42, %v2287_v4  ;;  %v2298_v20 = vsub.f32 %v2174_v23, %v2267_v53 }
 0x93b   : > { %v2299_v54 = vsub.f32 %v2175_v58, %v2271_v10  ;;  %v2300_v22 = vsub.f32 %v2176_v36, %v2275_v15  ;;  %v2301_v24 = vsub.f32 %v2177_v40, %v2279_v61  ;;  %v2302_v60 = vsub.f32 %v2178_v27, %v2283_v59 }
 0x93c   : > { %v2304_v7 = vmul.f32 1.442695, %v2296_v8  ;;  %v2306_v34 = vmul.f32 1.442695, %v2297_v32  ;;  %v2318_v35 = vmul.f32 1.442695, %v2303_v31 }
 0x93d   : > { %v2308_v55 = vmul.f32 1.442695, %v2298_v20  ;;  %v2310_v33 = vmul.f32 1.442695, %v2299_v54  ;;  %v2312_v23 = vmul.f32 1.442695, %v2300_v22 }
 0x93e   : > { %3841 = vpow2.f32 %v2304_v7  ;;  %v2314_v58 = vmul.f32 1.442695, %v2301_v24  ;;  %v2316_v36 = vmul.f32 1.442695, %v2302_v60  ;;  %v3860_v24 = vld [vmem:[%s4170_s22 + $0x18] sm:$0xff] }
 0x93f   : > { %3843 = vpow2.f32 %v2306_v34 }
 0x940   : > { %3845 = vpow2.f32 %v2318_v35 }
 0x941   : > { %3847 = vpow2.f32 %v2308_v55 }
 0x942   : > { %3849 = vpow2.f32 %v2310_v33 }
 0x943   : > { %3851 = vpow2.f32 %v2312_v23 }
 0x944   : > { %3853 = vpow2.f32 %v2314_v58  ;;  %v3861_v58 = vld [vmem:[%s4170_s22 + $0x20] sm:$0xff] }
 0x945   : > { %3855 = vpow2.f32 %v2316_v36 }
 0x948   : > { %v3842_v50 = vpop.eup %3841 }
 0x949   : > { %2329 = vperm.xlu1 %3789, %v3842_v50   ;;  %v3844_v42 = vpop.eup %3843 }
 0x94a   : > { %v4585_v30 = vpop.eup %3845 }
 0x94b   : > { %v3848_v62 = vpop.eup %3847  ;;  %2350 = vperm.xlu0 %3790, %v4585_v30  }
 0x94c   : > { %v3850_v63 = vpop.eup %3849 }
 0x94d   : > { %2332 = vperm.xlu1 %3789, %v3844_v42   ;;  %v3852_v38 = vpop.eup %3851 }
 0x94e   : > { %v3854_v40 = vpop.eup %3853 }
 0x94f   : > { %v3856_v25 = vpop.eup %3855 }
 0x951   : > { %2335 = vperm.xlu1 %3789, %v3848_v62  }
 0x955   : > { %2338 = vperm.xlu1 %3789, %v3850_v63  }
 0x959   : > { %2341 = vperm.xlu1 %3789, %v3852_v38  }
 0x95d   : > { %2344 = vperm.xlu1 %3789, %v3854_v40  }
 0x961   : > { %2347 = vperm.xlu1 %3789, %v3856_v25  }
 0x9c8   : > { %v2330_v27 = vpop.permute.xlu1 %2329 }
 0x9c9   : > { %v2355_v18 = vrot.slane %v2330_v27, %v4328_v56  ;;  %v3864_v27 = vld [vmem:[%s4170_s22 + $0x38] sm:$0xff] }
 0x9ca   : > { %v2351_v19 = vpop.permute.xlu0 %2350 }
 0x9cb   : > { %v2383_v48 = vrot.slane %v2351_v19, %v4328_v56 }
 0x9cc   : > { %v2333_v6 = vpop.permute.xlu1 %2332 }
 0x9cd   : > { %v2359_v9 = vrot.slane %v2333_v6, %v4328_v56 }
 0x9cf   : > { %v2384_v39 = vsel %vm852_vm1, %v2359_v9, %v2355_v18  ;;  %v3113_v9 = vld [vmem:[%s4798_s9 + $0x8] sm:$0xff] }
 0x9d0   : > { %v2336_v13 = vpop.permute.xlu1 %2335 }
 0x9d1   : > { %v2363_v46 = vrot.slane %v2336_v13, %v4328_v56 }
 0x9d3   : > { %v2385_v17 = vsel %vm854_vm2, %v2363_v46, %v2384_v39  ;;  %v3114_v46 = vld [vmem:[%s4798_s9 + $0x10] sm:$0xff] }
 0x9d4   : > { %v2339_v45 = vpop.permute.xlu1 %2338  ;;  %v3118_v39 = vld [vmem:[%s4798_s9 + $0x30] sm:$0xff] }
 0x9d5   : > { %v2367_v29 = vrot.slane %v2339_v45, %v4328_v56 }
 0x9d7   : > { %v2386_v0 = vsel %vm856_vm3, %v2367_v29, %v2385_v17 }
 0x9d8   : > { %v2342_v5 = vpop.permute.xlu1 %2341 }
 0x9d9   : > { %v2371_v57 = vrot.slane %v2342_v5, %v4328_v56  ;;  %v3112_v5 = vld [vmem:[%s4798_s9] sm:$0xff] }
 0x9da   : > { %v3713_v18 = vpack.c.bf16 %v3113_v9, %v3112_v5 }
 0x9db   : > { %v2387_v44 = vsel %vm858_vm4, %v2371_v57, %v2386_v0 }
 0x9dc   : > { %v2345_v37 = vpop.permute.xlu1 %2344 }
 0x9dd   : > { %v2375_v43 = vrot.slane %v2345_v37, %v4328_v56  ;;  %v3117_v37 = vld [vmem:[%s4798_s9 + $0x28] sm:$0xff] }
 0x9df   : > { %v2388_v49 = vsel %vm860_vm5, %v2375_v43, %v2387_v44  ;;  %v3119_v43 = vld [vmem:[%s4798_s9 + $0x38] sm:$0xff] }
 0x9e0   : > { %v2348_v52 = vpop.permute.xlu1 %2347  ;;  %v3722_v19 = vpack.c.bf16 %v3119_v43, %v3118_v39 }
 0x9e1   : > { %v2379_v47 = vrot.slane %v2348_v52, %v4328_v56 }
 0x9e3   : > { %v2389_v51 = vsel %vm862_vm6, %v2379_v47, %v2388_v49 }
 0x9e4   : > { %v2390_v4 = vsel %vm864_vm7, %v2383_v48, %v2389_v51 }
 0x9e5   : > { %v2392_v53 = vsel %vm867_vm8, %v2390_v4, 0.0 }
 0x9e6   : > { %2393 = vadd.xlane.f32.xlu1 %v2392_v53 }
 0xa73   : > { %v2394_v8 = vpop.xlane.xlu1 %2393 }
 0xa74   : > { %3857 = vrcp.f32 %v2394_v8 }
 0xa7e   : > { %v3858_v32 = vpop.eup %3857 }
 0xa7f   : > { %v2416_v7 = vrot.slane %v3858_v32, %v4211_v16  ;;  %v2400_v31 = vrot.slane %v3858_v32, %v4200_v12  ;;  %v2404_v34 = vrot.slane %v3858_v32, %v4197_v11  ;;  %v2408_v15 = vrot.slane %v3858_v32, %v4205_v14 }
 0xa80   : > { %v2412_v55 = vrot.slane %v3858_v32, %v4225_v21  ;;  %v2420_v16 = vrot.slane %v3858_v32, %v4242_v26  ;;  %v2424_v22 = vrot.slane %v3858_v32, %v4302_v3  ;;  %v2428_v33 = vrot.slane %v3858_v32, %v4299_v2  ;;  %v3859_v26 = vld [vmem:[%s4170_s22 + $0x8] sm:$0xff] }
 0xa81   : > { %v2441_v10 = vmul.f32 %v3852_v38, %v2416_v7  ;;  %v2437_v20 = vmul.f32 %v3842_v50, %v2400_v31  ;;  %v2438_v35 = vmul.f32 %v3844_v42, %v2404_v34  ;;  %v2439_v54 = vmul.f32 %v3848_v62, %v2408_v15 }
 0xa82   : > { %v2440_v61 = vmul.f32 %v3850_v63, %v2412_v55  ;;  %v2442_v12 = vmul.f32 %v3854_v40, %v2420_v16  ;;  %v2443_v11 = vmul.f32 %v3856_v25, %v2424_v22  ;;  %v2444_v14 = vmul.f32 %v4585_v30, %v2428_v33  ;;  %v3862_v63 = vld [vmem:[%s4170_s22 + $0x28] sm:$0xff]  ;;  %v3863_v40 = vld [vmem:[%s4170_s22 + $0x30] sm:$0xff] }
 0xa83   : > { %2767 = vperm.xlu1 %3789, %v2441_v10   ;;  %2447 = vperm.xlu0 %3790, %v2437_v20  }
 0xa87   : > { %2527 = vperm.xlu0 %3790, %v2438_v35  }
 0xa8b   : > { %2607 = vperm.xlu0 %3790, %v2439_v54  }
 0xa8f   : > { %2687 = vperm.xlu0 %3790, %v2440_v61  }
 0xa93   : > { %2847 = vperm.xlu0 %3790, %v2442_v12  }
 0xa97   : > { %2927 = vperm.xlu0 %3790, %v2443_v11  }
 0xa9b   : > { %3007 = vperm.xlu0 %3790, %v2444_v14  }
 0xb02   : > { %v2448_v50 = vpop.permute.xlu0 %2447  ;;  %v2768_v42 = vpop.permute.xlu1 %2767 }
 0xb03   : > { %v2452_v21 = vrot.slane %v2448_v50, %v4328_v56  ;;  %v2772_v30 = vrot.slane %v2768_v42, %v4328_v56 }
 0xb05   : > { %3637 = vmatmul.mubr.msk.f32.vlgmr.msra.gmra.mrb[16].mxu1 %vm867_vm8, %v2452_v21 }
 0xb06   : > { %v2528_v59 = vpop.permute.xlu0 %2527  ;;  %3640 = vmatpush3.msra.mxu1 %v3859_v26  ;;  %3641 = vmatprep.mubr.msk.f32.mxu1 %vm3998_vm9, %v3997_v41  ;;  %v3194_v26 = vld [vmem:[%s4799_s10] sm:$0xf] }
 0xb07   : > { %v2532_v3 = vrot.slane %v2528_v59, %v4328_v56  ;;  %3649 = vmatprep.subr.mxu1 %v3997_v41 }
 0xb09   : > { %3642 = vmatmul.mubr.msk.f32.vlgmr.msra.gmra.mrb[18].mxu1 %vm867_vm8, %v2532_v3 }
 0xb0a   : > { %v2608_v2 = vpop.permute.xlu0 %2607  ;;  %3650 = vmatpush3.msra.mxu1 %v3860_v24  ;;  %3651 = vmatprep.mubr.msk.f32.mxu1 %vm3998_vm9, %v3997_v41 }
 0xb0b   : > { %v2612_v23 = vrot.slane %v2608_v2, %v4328_v56  ;;  %3659 = vmatprep.subr.mxu1 %v3997_v41 }
 0xb0d   : > { %3647 = vmatmul.mubr.msk.f32.vlgmr.msra.gmra.mrb[10].mxu0 %vm867_vm8, %v2612_v23 }
 0xb0e   : > { %v2688_v60 = vpop.permute.xlu0 %2687  ;;  %3655 = vmatpush3.msra.mxu0 %v3861_v58  ;;  %3656 = vmatprep.mubr.msk.f32.mxu0 %vm3998_vm9, %v3997_v41 }
 0xb0f   : > { %v2692_v62 = vrot.slane %v2688_v60, %v4328_v56  ;;  %3664 = vmatprep.subr.mxu0 %v3997_v41 }
 0xb11   : > { %3652 = vmatmul.mubr.msk.f32.vlgmr.msra.gmra.mrb[20].mxu1 %vm867_vm8, %v2692_v62  ;;  %3657 = vmatmul.mubr.msk.f32.vlgmr.msra.gmra.mrb[12].mxu0 %vm867_vm8, %v2772_v30 }
 0xb12   : > { %v2848_v36 = vpop.permute.xlu0 %2847  ;;  %3660 = vmatpush3.msra.mxu1 %v3862_v63  ;;  %3661 = vmatprep.mubr.msk.f32.mxu1 %vm3998_vm9, %v3997_v41 }
 0xb13   : > { %v2852_v38 = vrot.slane %v2848_v36, %v4328_v56  ;;  %3665 = vmatpush3.msra.mxu0 %v3863_v40  ;;  %3666 = vmatprep.mubr.msk.f32.mxu0 %vm3998_vm9, %v3997_v41 }
 0xb14   : > { %3669 = vmatprep.subr.mxu1 %v3997_v41  ;;  %3712 = vmatprep.subr.bf16.mxu0 %v3999_v28 }
 0xb15   : > { %3662 = vmatmul.mubr.msk.f32.vlgmr.msra.gmra.mrb[22].mxu1 %vm867_vm8, %v2852_v38 }
 0xb16   : > { %v2928_v25 = vpop.permute.xlu0 %2927  ;;  %3670 = vmatpush3.msra.mxu1 %v3864_v27  ;;  %3671 = vmatprep.mubr.msk.f32.mxu1 %vm3998_vm9, %v3997_v41 }
 0xb17   : > { %v2932_v6 = vrot.slane %v2928_v25, %v4328_v56  ;;  %3693 = vmatprep.subr.mxu1 %v3997_v41 }
 0xb19   : > { %3667 = vmatmul.mubr.msk.f32.vlgmr.msra.gmra.mrb[14].mxu0 %vm867_vm8, %v2932_v6 }
 0xb1a   : > { %v3008_v13 = vpop.permute.xlu0 %3007  ;;  %3690 = vmatprep.mubr.msk.f32.mxu0 %vm3998_vm9, %v3997_v41  ;;  %3714 = vmatpush3.bf16.msra.mxu0 %v3713_v18 }
 0xb1b   : > { %v3012_v45 = vrot.slane %v3008_v13, %v4328_v56  ;;  %v3115_v56 = vld [vmem:[%s4798_s9 + $0x18] sm:$0xff]  ;;  %3715 = vmatprep.subr.bf16.mxu0 %v3999_v28 }
 0xb1c   : > { %v3716_v29 = vpack.c.bf16 %v3115_v56, %v3114_v46 }
 0xb1d   : > { %3672 = vmatmul.mubr.msk.f32.vlgmr.msra.gmra.mrb[24].mxu1 %vm867_vm8, %v3012_v45 }
 0xb1e   : > { %3695 = vmatprep.mubr.msk.f32.mxu1 %vm3998_vm9, %v3997_v41  ;;  %v3116_v41 = vld [vmem:[%s4798_s9 + $0x20] sm:$0xff]  ;;  %3717 = vmatpush3.bf16.msra.mxu0 %v3716_v29 }
 0xb1f   : > { %v3719_v57 = vpack.c.bf16 %v3117_v37, %v3116_v41  ;;  %3718 = vmatprep.subr.bf16.mxu0 %v3999_v28  ;;  %3694 = vmatpush3.msk.msra.mxu1 %vm3201_vm11, %v3194_v26 }
 0xb22   : > { %3720 = vmatpush3.bf16.msra.mxu0 %v3719_v57 }
 0xb23   : > { %3721 = vmatprep.subr.bf16.mxu0 %v3999_v28 }
 0xb26   : > { %3723 = vmatpush3.bf16.msra.mxu0 %v3722_v19 }
 0xbd8   : > { %v2521_v17 = vpop.f32.mrb[16].mxu1 }
 0xbd9   : > { %v3638_v0 = vpop.f32.mrb[17].mxu1 }
 0xbdc   : > { %v2601_v52 = vpop.f32.mrb[18].mxu1 }
 0xbdd   : > { %v3094_v44 = vrot.slane %v2601_v52, 7  ;;  %v3643_v47 = vpop.f32.mrb[19].mxu1 }
 0xbdf   : > { %v3095_v48 = vsel %vm852_vm1, %v3094_v44, %v2521_v17 }
 0xbe0   : > { %v2681_v49 = vpop.f32.mrb[10].mxu0 }
 0xbe1   : > { %v3096_v51 = vrot.slane %v2681_v49, 6  ;;  %v3648_v4 = vpop.f32.mrb[11].mxu0 }
 0xbe3   : > { %v3097_v53 = vsel %vm854_vm2, %v3096_v51, %v3095_v48 }
 0xbe4   : > { %v2761_v8 = vpop.f32.mrb[20].mxu1  ;;  %v2841_v32 = vpop.f32.mrb[12].mxu0 }
 0xbe5   : > { %v3098_v7 = vrot.slane %v2761_v8, 5  ;;  %v3100_v31 = vrot.slane %v2841_v32, 4  ;;  %v3653_v10 = vpop.f32.mrb[21].mxu1  ;;  %v3658_v20 = vpop.f32.mrb[13].mxu0 }
 0xbe7   : > { %v3099_v28 = vsel %vm856_vm3, %v3098_v7, %v3097_v53 }
 0xbe8   : > { %v3101_v34 = vsel %vm858_vm4, %v3100_v31, %v3099_v28  ;;  %v2921_v35 = vpop.f32.mrb[22].mxu1 }
 0xbe9   : > { %v3102_v15 = vrot.slane %v2921_v35, 3  ;;  %v3663_v54 = vpop.f32.mrb[23].mxu1 }
 0xbeb   : > { %v3103_v55 = vsel %vm860_vm5, %v3102_v15, %v3101_v34 }
 0xbec   : > { %v3001_v61 = vpop.f32.mrb[14].mxu0 }
 0xbed   : > { %v3104_v16 = vrot.slane %v3001_v61, 2  ;;  %v3668_v12 = vpop.f32.mrb[15].mxu0 }
 0xbef   : > { %v3105_v22 = vsel %vm862_vm6, %v3104_v16, %v3103_v55 }
 0xbf0   : > { %v3081_v11 = vpop.f32.mrb[24].mxu1 }
 0xbf1   : > { %v3106_v33 = vrot.slane %v3081_v11, 1  ;;  %v3673_v14 = vpop.f32.mrb[25].mxu1 }
 0xbf3   : > { %v3107_v50 = vsel %vm864_vm7, %v3106_v33, %v3105_v22 }
 0xbf4   : > { %3108 = vrot.lane.b32.xlu0 %v3107_v50, %s4000_s24  ;;  %s4698_s24 = sand.u32 1, %s3983_s28  }
 0xbf5   : > { %s3459_s26 = sshll.u32 %s4698_s24, 3 }
 0xbf6   : > { %s500_s22 = scalar_lea.vmem [#allocation7], %s3459_s26  ;;  %s4711_s14 = scalar_lea.vmem [#allocation6], %s3459_s26 }
 0xbf7   : > { %s3314_s17 = sshll.u32 %s500_s22, 4  ;;  %s4709_s17 = int_to_ptr.vmem [resolvable:$true] %s3314_s17 }
 0xbf8   : > { %p3900_p3 = scmp.lt.s32.totalorder %s4709_s17, %s3898_s18 }
 0xc66   : > { %v3109_v21 = vpop.permute.xlu0 %3108 }
 0xc67   : > { %v3111_v59 = vsel %vm534_vm0, %v4482_v1, %v3109_v21  ;;  %v3276_v1 = vstv %s3275_s23  ;;  %s3893_s23 = scalar_lea.vmem %s4709_s17, 128 }
 0xc68   : > { %3691 = vmatmul.mubr.msk.f32.vlgmr.msra.gmra.mrb[16].mxu0 %vm3120_vm10, %v3111_v59  ;;  %p3894_p9 = scmp.ne.s32.totalorder %s4709_s17, %s3893_s23  ;;  %p3901_p4 = scmp.lt.s32.totalorder %s3899_s16, %s3893_s23 }
 0xc6a   : > { %p3895_p12 = pnand %p3894_p9, %p4821_p10  ;;  %p3902_p7 = por %p3901_p4, %p3900_p3 }
 0xc6c   : > { %p3896_p2 = pneg %p3895_p12 }
 0xc6e   : > { %p3903_p8 = pnand %p3902_p7, %p3896_p2 }
 0xd3b   : > { %v3190_v3 = vpop.f32.mrb[16].mxu0 }
 0xd3c   : > { %3196 = vrot.lane.b32.xlu1 %v3190_v3, %s4003_s6  ;;  %v3692_v2 = vpop.f32.mrb[17].mxu0  ;;  %s3288_s6 = scalar_lea.sflag [#allocation8], %s4698_s24 }
 0xdae   : > { %v3197_v24 = vpop.permute.xlu1 %3196 }
 0xdaf   : > { %3696 = vmatmul.mubr.msk.f32.vlgmr.msra.gmra.mrb[26].mxu1 %vm3198_vm12, %v3197_v24 }
 0xe82   : > { %v3271_v23 = vpop.f32.mrb[26].mxu1 }
 0xe83   : > { %v3277_v42 = vmul.f32 %v3276_v1, %v3271_v23  ;;  %3281 = vst.msk [vmem:[%s500_s22] sm:$0xff] %vm3279_vm13, %v3271_v23  ;;  %v3697_v60 = vpop.f32.mrb[27].mxu1 }
 0xe84   : > { %3906 = shalt.err (!%p3903_p8)
}
 0xe85   : > { %s3907_s26 = scalar_lea.hbm %s4707_s21, 128  ;;  %s3911_s29 = scalar_lea.hbm %s4802_s13, 256 }
 0xe86   : > { %p3908_p11 = scmp.ne.s32.totalorder %s4707_s21, %s3907_s26  ;;  %p3912_p0 = scmp.lt.u32.totalorder %s4707_s21, %s4802_s13 }
 0xe87   : > { %p3913_p5 = scmp.lt.u32.totalorder %s3911_s29, %s3907_s26  ;;  %p3915_p9 = scmp.lt.u32.totalorder %s3907_s26, %s4707_s21 }
 0xe88   : > { %p3909_p13 = pnand %p3908_p11, %p4821_p10 }
 0xe89   : > { %p3914_p6 = por %p3913_p5, %p3912_p0 }
 0xe8a   : > { %p3910_p1 = pneg %p3909_p13 }
 0xe8b   : > { %p3916_p12 = por %p3915_p9, %p3914_p6 }
 0xe8d   : > { %p3917_p2 = pnand %p3916_p12, %p3910_p1 }
 0xe8f   : > { %3920 = shalt.err (!%p3917_p2)
}
 0xe90   : > { %3729 = dma.vmem_to_hbm [thread:$0]  (%p4821_p10), %s4709_s17, 128, %s4707_s21, %s3288_s6   ;;  %v3278_v58 = vadd.f32 %v3277_v42, %v3190_v3 }
 0xe91   : > { %s4822_s16 = sshll.u32 %s4100_s11, 7  ;;  %s4823_s26 = sshll.u32 %s4711_s14, 4  ;;  %s4746_s26 = int_to_ptr.vmem [resolvable:$true] %s4823_s26 }
 0xe92   : > { %s4742_s23 = scalar_lea.hbm %s4801_s12, %s4822_s16  ;;  %3280 = vst.msk [vmem:[%s4711_s14] sm:$0xff] %vm3279_vm13, %v3278_v58  ;;  %s3283_s22 = scalar_lea.sflag [#allocation5], %s4698_s24 }
 0xe93   : > { %s3921_s29 = scalar_lea.vmem %s4746_s26, 128  ;;  %s4005_s11 = smov [#allocation6]  }
 0xe94   : > { %p3922_p3 = scmp.ne.s32.totalorder %s4746_s26, %s3921_s29  ;;  %s3925_s17 = sshll.u32 %s4005_s11, 4  ;;  %s3926_s17 = int_to_ptr.vmem [resolvable:$false] %s3925_s17 }
 0xe95   : > { %s3927_s21 = scalar_lea.vmem %s3926_s17, 256  ;;  %p3928_p8 = scmp.lt.s32.totalorder %s4746_s26, %s3926_s17 }
 0xe96   : > { %p3923_p4 = pnand %p3922_p3, %p4821_p10  ;;  %p3929_p11 = scmp.lt.s32.totalorder %s3927_s21, %s3921_s29 }
 0xe98   : > { %p3924_p7 = pneg %p3923_p4  ;;  %p3930_p13 = por %p3929_p11, %p3928_p8 }
 0xe9a   : > { %p3931_p1 = pnand %p3930_p13, %p3924_p7 }
 0xe9c   : > { %3934 = shalt.err (!%p3931_p1)
}
 0xe9d   : > { %s3935_s24 = scalar_lea.hbm %s4742_s23, 128  ;;  %s3939_s18 = scalar_lea.hbm %s4801_s12, 256 }
 0xe9e   : > { %p3936_p0 = scmp.ne.s32.totalorder %s4742_s23, %s3935_s24  ;;  %p3940_p9 = scmp.lt.u32.totalorder %s4742_s23, %s4801_s12 }
 0xe9f   : > { %p3941_p12 = scmp.lt.u32.totalorder %s3939_s18, %s3935_s24  ;;  %p3943_p3 = scmp.lt.u32.totalorder %s3935_s24, %s4742_s23 }
 0xea0   : > { %p3937_p5 = pnand %p3936_p0, %p4821_p10 }
 0xea1   : > { %p3942_p2 = por %p3941_p12, %p3940_p9 }
 0xea2   : > { %p3938_p6 = pneg %p3937_p5 }
 0xea3   : > { %p3944_p4 = por %p3943_p3, %p3942_p2 }
 0xea5   : > { %p3945_p7 = pnand %p3944_p4, %p3938_p6 }
 0xea7   : > { %3948 = shalt.err (!%p3945_p7)
}
 0xea8   : > { %3728 = dma.vmem_to_hbm [thread:$0]  (%p4821_p10), %s4746_s26, 128, %s4742_s23, %s3283_s22  }
 0xea9 PF: > { %p3745_p8 = scmp.ge.s32.totalorder %s3991_s30, 2  ;;  %s3326_s25 = sand.u32 1, %s3979_s27  }
 0xeaa   : > { %p4824_p11 = scmp.ne.s32.totalorder %s4813_s20, 0  ;;  %s3327_s29 = scalar_lea.sflag [#allocation5], %s3326_s25 }
 0xeac   : > { %p3737_p13 = pnand %p3745_p8, %p4824_p11 }
 0xeae   : > { %3970 = dma.done.wait (!%p3737_p13), %s3327_s29, 128  }
 0xeaf   : > { %3972 = vsyncadd (!%p3737_p13), %s3327_s29, 4294967168  ;;  %s3336_s11 = scalar_lea.sflag [#allocation8], %s3326_s25 }
 0xeb0   : > { %3974 = dma.done.wait (!%p3737_p13), %s3336_s11, 128  }
 0xeb1   : > { %3976 = vsyncadd (!%p3737_p13), %s3336_s11, 4294967168  ;;  %s4825_s19 = sld [smem:[#allocation12_spill]]  ;;  %s4826_s29 = sld [smem:[#allocation13_spill]] }
 0xeb2   : > { %p29_p10 = scmp.ge.s32.totalorder %s4104_s15, 4   ;;  %s4827_s27 = smov %s3983_s28 }
 0xeb3   : > { %s4829_s30 = smov %s4104_s15 }
 0xeb4   :  { %31 = sbr.rel (!%p29_p10) target bundleno = 10 (0xa), region = 134 }
 0xeb7   : > { %s4828_s28 = smov %s4825_s19 }
 0xebb   :  { %3341 = vsyncpa [#allocation4], 1 }
 0xebc   :  { %3343 = vsyncpa [#allocation4 + $0x1], 1 }
 0xebd   :  { %3344 = vsyncpa [#allocation5], 1 }
 0xebe   :  { %3346 = vsyncpa [#allocation5 + $0x1], 1 }
 0xebf   :  { %3347 = vsyncpa [#allocation8], 1 }
 0xec0   :  { %3349 = vsyncpa [#allocation8 + $0x1], 1 }

</bundles_post_ra>
